<compile_context>
chip_gen: v5e
topology: v5e:2x2
jax: 0.10.0
libtpu: 0.0.40
codegen_flags: <defaults>
</compile_context>

<pallas_src>
import functools

import jax
import jax.numpy as jnp
from jax import lax
from jax.experimental import pallas as pl
from jax.experimental.pallas import tpu as pltpu


# ----------------------------- Pallas kernel ------------------------------ #
def lstm_fc_kernel(x_ref, wih_ref, whh_ref, b_ref, wfc_ref, bfc_ref,
                   out_ref, h_scr, c_scr, gx_scr,
                   *, t_chunk, b_sz, hidden, seq_len):
    c_it = pl.program_id(0)          # iteration c: consume chunk c-1, produce chunk c
    n_it = pl.num_programs(0)        # = n_chunks + 1
    H = hidden

    consume_slot = (c_it + 1) % 2    # parity of chunk c_it - 1
    produce_slot = c_it % 2          # parity of chunk c_it

    @pl.when(c_it == 0)
    def _init():
        h_scr[...] = jnp.zeros_like(h_scr)
        c_scr[...] = jnp.zeros_like(c_scr)
        # The first (dummy) consume reads slot 1; all-zero gates keep the
        # zero-initialised (h, c) state exactly unchanged (f=i=o=0.5, g=0).
        gx_scr[1] = jnp.zeros((t_chunk * b_sz, 4 * H), jnp.float32)

    # --------------------------------------------------------------------- #
    # Consume: per-timestep recurrence over chunk c_it-1, using the input
    # projection produced during the previous grid iteration.  h/c are SSA
    # values through the unrolled loop (one scratch load/store per chunk).
    # At c_it == 0 this runs a harmless dummy chunk on all-zero gates.
    # --------------------------------------------------------------------- #
    w_hh = whh_ref[...]                                   # (Hp, 4Hp) bf16
    h = h_scr[...]                                        # (Bp, Hp)  bf16
    c = c_scr[...]                                        # (Bp, Hp)  f32
    cc = c_it - 1                                         # chunk being consumed
    full_tail = (seq_len % t_chunk == 0)
    for t in range(t_chunk):
        gx_t = gx_scr[consume_slot, t * b_sz:(t + 1) * b_sz, :]     # (Bp, 4Hp)
        gates = gx_t + jnp.dot(h, w_hh, preferred_element_type=jnp.float32)
        # Gate layout (reordered in wrapper): [i, f, o, g]; all slices are
        # 128-lane aligned because H is padded to a multiple of 128.
        sig = jax.nn.sigmoid(gates[:, :3 * H])            # one EUP pass, 3 gates
        i_g = sig[:, 0 * H:1 * H]
        f_g = sig[:, 1 * H:2 * H]
        o_g = sig[:, 2 * H:3 * H]
        g_g = jnp.tanh(gates[:, 3 * H:])
        c_new = f_g * c + i_g * g_g
        h_new = (o_g * jnp.tanh(c_new)).astype(h.dtype)
        if full_tail:
            c, h = c_new, h_new
        else:                       # mask padded timesteps of the ragged tail
            valid = cc * t_chunk + t < seq_len
            c = jnp.where(valid, c_new, c)
            h = jnp.where(valid, h_new, h)
    h_scr[...] = h
    c_scr[...] = c

    # --------------------------------------------------------------------- #
    # Produce: input projection for chunk c_it — one big MXU matmul written
    # into the other ping-pong slot; no data dependence on the recurrence
    # above, so the scheduler can overlap it.  On the final iteration it
    # recomputes the (clamped) last chunk and the result is never read.
    # --------------------------------------------------------------------- #
    gx_scr[produce_slot] = (jnp.dot(x_ref[...], wih_ref[...],
                                    preferred_element_type=jnp.float32)
                            + b_ref[...])

    @pl.when(c_it == n_it - 1)
    def _final():
        out_ref[...] = (jnp.dot(h_scr[...], wfc_ref[...],
                                preferred_element_type=jnp.float32)
                        + bfc_ref[...]).astype(out_ref.dtype)


# ------------------------------- wrapper ----------------------------------- #
def lstm_text_encoder_pallas(tokens, params, t_chunk=None):
    """tokens: (B, T) int32.  Returns (B, 512) float32."""
    emb = params["embedding"]                              # (V, E)
    B, T = tokens.shape
    E = emb.shape[1]
    H = params["w_hh_t"].shape[0]
    OUT = params["w_fc_t"].shape[1]

    LANE, SUBLANE = 128, 8
    Hp = int(pl.cdiv(H, LANE)) * LANE                      # lane-aligned hidden
    Bp = int(pl.cdiv(B, SUBLANE)) * SUBLANE                # sublane-aligned batch

    # Reorder PyTorch gate layout [i, f, g, o] -> [i, f, o, g] (three sigmoid
    # gates contiguous) and zero-pad each gate block H -> Hp.  Zero padding is
    # exact: padded hidden lanes stay identically 0 through the recurrence.
    def reorder_pad_gates(a):
        i, f, g, o = jnp.split(a, 4, axis=-1)
        pw = [(0, 0)] * (a.ndim - 1) + [(0, Hp - H)]
        p = lambda x: jnp.pad(x, pw)
        return jnp.concatenate([p(i), p(f), p(o), p(g)], axis=-1)

    w_ih = reorder_pad_gates(params["w_ih_t"]).astype(jnp.bfloat16)        # (E, 4Hp)
    w_hh = reorder_pad_gates(
        jnp.pad(params["w_hh_t"], ((0, Hp - H), (0, 0)))).astype(jnp.bfloat16)  # (Hp, 4Hp)
    bias = reorder_pad_gates(params["b_ih"] + params["b_hh"]).astype(jnp.float32)  # (1, 4Hp)
    w_fc = jnp.pad(params["w_fc_t"], ((0, Hp - H), (0, 0))).astype(jnp.bfloat16)   # (Hp, OUT)
    b_fc = params["b_fc"].astype(jnp.float32)                                      # (1, OUT)

    # Chunk sizing: ~256 MXU rows per hoisted input-projection matmul
    # (v6e/v7x 256x256 MXU, still a multiple of 128 for v5e), capped at T.
    if t_chunk is None:
        t_chunk = max(1, min(T, max(1, 256 // Bp)))
    n_chunks = int(pl.cdiv(T, t_chunk))
    T_pad = n_chunks * t_chunk

    # Embedding gather, produced directly time-major; batch padded to Bp and
    # padded timesteps zero-filled (masked inside the kernel).
    # TODO(synk): for large T*B*E, fuse the gather into the kernel via
    # num_scalar_prefetch token ids + pl.Element row gather to halve activation
    # HBM traffic (matters most on v5e).
    x_tm = jnp.take(emb.astype(jnp.bfloat16), tokens.T, axis=0)            # (T, B, E)
    x_tm = jnp.pad(x_tm, ((0, T_pad - T), (0, Bp - B), (0, 0)))
    x_flat = x_tm.reshape(T_pad * Bp, E)                                   # (T_pad*Bp, E)

    kernel = functools.partial(lstm_fc_kernel, t_chunk=t_chunk, b_sz=Bp,
                               hidden=Hp, seq_len=T)

    const = lambda c: (0, 0)          # constant blocks -> DMA'd once

    def const_spec(shape):
        # Single-buffer the never-moving operands (their block index is
        # constant, so double-buffering only doubles resident VMEM).
        try:
            return pl.BlockSpec(shape, const, pipeline_mode=pl.Buffered(1))
        except (TypeError, AttributeError):
            return pl.BlockSpec(shape, const)

    flops = 2 * T_pad * Bp * (E + Hp) * 4 * Hp + 2 * Bp * Hp * OUT
    transcendentals = 5 * T_pad * Bp * Hp
    bytes_accessed = (T_pad * Bp * E * 2 + (E + Hp) * 4 * Hp * 2
                      + Hp * OUT * 2 + (4 * Hp + OUT) * 4 + Bp * OUT * 4)

    # VMEM: x double-buffer + single-buffered weights + gx ping-pong + state,
    # plus headroom; capped at 48 MiB so production shapes still leave margin
    # under v7x's 64 MiB physical VMEM.
    vmem_need = (2 * t_chunk * Bp * E * 2
                 + (E + Hp) * 4 * Hp * 2 + Hp * OUT * 2 + (4 * Hp + OUT) * 4
                 + 2 * t_chunk * Bp * 4 * Hp * 4
                 + Bp * (2 * Hp + 4 * Hp + 4 * OUT)
                 + (4 << 20))
    vmem_limit = int(min(max(vmem_need, 32 << 20), 48 << 20))

    # TODO(synk): on v7x, add a leading 'parallel' batch-block grid axis so the
    # second TensorCore runs an independent batch shard, keep W_hh resident via
    # pltpu.matmul_push_rhs, and defer W_fc/b_fc (only used in the last
    # iteration) via a late manual DMA.
    out = pl.pallas_call(
        kernel,
        out_shape=jax.ShapeDtypeStruct((Bp, OUT), jnp.float32),
        grid_spec=pltpu.PrefetchScalarGridSpec(
            num_scalar_prefetch=0,
            grid=(n_chunks + 1,),
            in_specs=[
                # chunk c's x block (index clamped on the final iteration,
                # whose produce result is never consumed).
                pl.BlockSpec((t_chunk * Bp, E),
                             lambda c: (jnp.minimum(c, n_chunks - 1), 0)),
                const_spec((E, 4 * Hp)),                 # W_ih^T
                const_spec((Hp, 4 * Hp)),                # W_hh^T
                const_spec((1, 4 * Hp)),                 # b_ih + b_hh
                const_spec((Hp, OUT)),                   # W_fc^T
                const_spec((1, OUT)),                    # b_fc
            ],
            out_specs=pl.BlockSpec((Bp, OUT), const),
            scratch_shapes=[
                pltpu.VMEM((Bp, Hp), jnp.bfloat16),                 # h state
                pltpu.VMEM((Bp, Hp), jnp.float32),                  # c state
                pltpu.VMEM((2, t_chunk * Bp, 4 * Hp), jnp.float32), # gx ping-pong
            ],
        ),
        compiler_params=pltpu.CompilerParams(
            dimension_semantics=("arbitrary",),      # serial recurrence in time
            vmem_limit_bytes=vmem_limit,
        ),
        cost_estimate=pl.CostEstimate(flops=int(flops),
                                      transcendentals=int(transcendentals),
                                      bytes_accessed=int(bytes_accessed)),
    )(x_flat, w_ih, w_hh, bias, w_fc, b_fc)
    return out[:B]


# --------------------------- pure-JAX reference ---------------------------- #
def reference(tokens, params):
    emb = params["embedding"]
    x = jnp.take(emb, tokens, axis=0)                 # (B, T, E), f32
    B = x.shape[0]
    H = params["w_hh_t"].shape[0]

    def step(carry, x_t):
        h, c = carry
        gates = (x_t @ params["w_ih_t"] + h @ params["w_hh_t"]
                 + params["b_ih"] + params["b_hh"])
        i = jax.nn.sigmoid(gates[:, 0 * H:1 * H])
        f = jax.nn.sigmoid(gates[:, 1 * H:2 * H])
        g = jnp.tanh(gates[:, 2 * H:3 * H])
        o = jax.nn.sigmoid(gates[:, 3 * H:4 * H])
        c = f * c + i * g
        h = o * jnp.tanh(c)
        return (h, c), None

    h0 = jnp.zeros((B, H), jnp.float32)
    c0 = jnp.zeros((B, H), jnp.float32)
    (hT, _), _ = lax.scan(step, (h0, c0), jnp.transpose(x, (1, 0, 2)))
    return hT @ params["w_fc_t"] + params["b_fc"]


# ---------------------------------- main ----------------------------------- #
if __name__ == "__main__":
    VOCAB, EMBED, HIDDEN, OUT = 100, 32, 32, 512
    B, T = 2, 8

    key = jax.random.PRNGKey(0)
    keys = jax.random.split(key, 8)
    scale = 0.1
    params = {
        "embedding": scale * jax.random.normal(keys[0], (VOCAB, EMBED), jnp.float32),
        # stored pre-transposed: W_ih is (4H, E) in PyTorch -> (E, 4H) here
        "w_ih_t": scale * jax.random.normal(keys[1], (EMBED, 4 * HIDDEN), jnp.float32),
        "w_hh_t": scale * jax.random.normal(keys[2], (HIDDEN, 4 * HIDDEN), jnp.float32),
        "b_ih": scale * jax.random.normal(keys[3], (1, 4 * HIDDEN), jnp.float32),
        "b_hh": scale * jax.random.normal(keys[4], (1, 4 * HIDDEN), jnp.float32),
        "w_fc_t": scale * jax.random.normal(keys[5], (HIDDEN, OUT), jnp.float32),
        "b_fc": scale * jax.random.normal(keys[6], (1, OUT), jnp.float32),
    }
    tokens = jax.random.randint(keys[7], (B, T), 0, VOCAB, dtype=jnp.int32)

    out = lstm_text_encoder_pallas(tokens, params)
    out = jax.block_until_ready(out)

    ref = jax.block_until_ready(reference(tokens, params))
    assert out.shape == (B, OUT), out.shape
    # bf16 matmuls with f32 accumulation -> slightly looser tolerance vs f32 ref
    err = float(jnp.max(jnp.abs(out - ref)))
    assert err < 2e-2, err

    print("KERNEL_OK")
</pallas_src>

<mosaic_0001>
module attributes {stable_mosaic.version = 11 : i64} {
  func.func @lstm_fc_kernel(%arg0: i32, %arg1: memref<64x32xbf16, #tpu.memory_space<vmem>>, %arg2: memref<32x512xbf16, #tpu.memory_space<vmem>>, %arg3: memref<128x512xbf16, #tpu.memory_space<vmem>>, %arg4: memref<1x512xf32, #tpu.memory_space<vmem>>, %arg5: memref<128x512xbf16, #tpu.memory_space<vmem>>, %arg6: memref<1x512xf32, #tpu.memory_space<vmem>>, %arg7: memref<8x512xf32, #tpu.memory_space<vmem>>, %arg8: memref<8x128xbf16, #tpu.memory_space<vmem>>, %arg9: memref<8x128xf32, #tpu.memory_space<vmem>>, %arg10: memref<2x64x512xf32, #tpu.memory_space<vmem>>) attributes {dimension_semantics = [#tpu.dimension_semantics<arbitrary>], iteration_bounds = array<i64: 2>, scalar_prefetch = 0 : i64, scratch_operands = 3 : i64, tpu.core_type = #tpu.core_type<tc>, window_params = [{transform_indices = @transform_0, window_bounds = array<i64: 64, 32>}, {pipeline_mode = #tpu.pipeline_mode<synchronous>, transform_indices = @transform_1, window_bounds = array<i64: 32, 512>}, {pipeline_mode = #tpu.pipeline_mode<synchronous>, transform_indices = @transform_2, window_bounds = array<i64: 128, 512>}, {pipeline_mode = #tpu.pipeline_mode<synchronous>, transform_indices = @transform_3, window_bounds = array<i64: 1, 512>}, {pipeline_mode = #tpu.pipeline_mode<synchronous>, transform_indices = @transform_4, window_bounds = array<i64: 128, 512>}, {pipeline_mode = #tpu.pipeline_mode<synchronous>, transform_indices = @transform_5, window_bounds = array<i64: 1, 512>}, {pipeline_mode = #tpu.pipeline_mode<synchronous>, transform_indices = @transform_6, window_bounds = array<i64: 8, 512>}]} {
    %c1_i32 = arith.constant 1 : i32
    %0 = arith.addi %arg0, %c1_i32 : i32
    %c2_i32 = arith.constant 2 : i32
    %c0_i32 = arith.constant 0 : i32
    %1 = arith.cmpi eq, %c2_i32, %c0_i32 : i32
    %c1_i32_0 = arith.constant 1 : i32
    %2 = arith.select %1, %c1_i32_0, %c2_i32 : i32
    %3 = arith.remsi %0, %2 : i32
    %c0_i32_1 = arith.constant 0 : i32
    %4 = arith.cmpi ne, %3, %c0_i32_1 : i32
    %c0_i32_2 = arith.constant 0 : i32
    %5 = arith.cmpi slt, %3, %c0_i32_2 : i32
    %c0_i32_3 = arith.constant 0 : i32
    %6 = arith.cmpi slt, %2, %c0_i32_3 : i32
    %7 = arith.xori %5, %6 : i1
    %8 = arith.andi %7, %4 : i1
    %9 = arith.addi %3, %2 : i32
    %10 = arith.select %8, %9, %3 : i32
    %c2_i32_4 = arith.constant 2 : i32
    %c0_i32_5 = arith.constant 0 : i32
    %11 = arith.cmpi eq, %c2_i32_4, %c0_i32_5 : i32
    %c1_i32_6 = arith.constant 1 : i32
    %12 = arith.select %11, %c1_i32_6, %c2_i32_4 : i32
    %13 = arith.remsi %arg0, %12 : i32
    %c0_i32_7 = arith.constant 0 : i32
    %14 = arith.cmpi ne, %13, %c0_i32_7 : i32
    %c0_i32_8 = arith.constant 0 : i32
    %15 = arith.cmpi slt, %13, %c0_i32_8 : i32
    %c0_i32_9 = arith.constant 0 : i32
    %16 = arith.cmpi slt, %12, %c0_i32_9 : i32
    %17 = arith.xori %15, %16 : i1
    %18 = arith.andi %17, %14 : i1
    %19 = arith.addi %13, %12 : i32
    %20 = arith.select %18, %19, %13 : i32
    %c0_i32_10 = arith.constant 0 : i32
    %21 = arith.cmpi eq, %arg0, %c0_i32_10 : i32
    %22 = arith.extui %21 : i1 to i32
    %c0_i32_11 = arith.constant 0 : i32
    %23 = arith.cmpi ne, %22, %c0_i32_11 : i32
    scf.if %23 {
      %cst_56 = arith.constant 0.000000e+00 : bf16
      %218 = vector.broadcast %cst_56 : bf16 to vector<8x128xbf16>
      %c0_57 = arith.constant 0 : index
      %c0_58 = arith.constant 0 : index
      %219 = vector.load %arg8[%c0_57, %c0_58] : memref<8x128xbf16, #tpu.memory_space<vmem>>, vector<8x128xbf16>
      tpu.vector_store %arg8[%c0_57, %c0_58], %218 {strides = array<i32>} : memref<8x128xbf16, #tpu.memory_space<vmem>>, vector<8x128xbf16>,
      %cst_59 = arith.constant 0.000000e+00 : f32
      %220 = vector.broadcast %cst_59 : f32 to vector<8x128xf32>
      %c0_60 = arith.constant 0 : index
      %c0_61 = arith.constant 0 : index
      %221 = vector.load %arg9[%c0_60, %c0_61] : memref<8x128xf32, #tpu.memory_space<vmem>>, vector<8x128xf32>
      tpu.vector_store %arg9[%c0_60, %c0_61], %220 {strides = array<i32>} : memref<8x128xf32, #tpu.memory_space<vmem>>, vector<8x128xf32>,
      %cst_62 = arith.constant 0.000000e+00 : f32
      %222 = vector.broadcast %cst_62 : f32 to vector<64x512xf32>
      %c1 = arith.constant 1 : index
      %c0_63 = arith.constant 0 : index
      %c0_64 = arith.constant 0 : index
      %223 = vector.load %arg10[%c1, %c0_63, %c0_64] : memref<2x64x512xf32, #tpu.memory_space<vmem>>, vector<1x64x512xf32>
      %224 = vector.shape_cast %223 : vector<1x64x512xf32> to vector<64x512xf32>
      %225 = vector.shape_cast %222 : vector<64x512xf32> to vector<1x64x512xf32>
      tpu.vector_store %arg10[%c1, %c0_63, %c0_64], %225 {strides = array<i32>} : memref<2x64x512xf32, #tpu.memory_space<vmem>>, vector<1x64x512xf32>,
    } else {
    }
    %c0 = arith.constant 0 : index
    %c0_12 = arith.constant 0 : index
    %24 = vector.load %arg3[%c0, %c0_12] : memref<128x512xbf16, #tpu.memory_space<vmem>>, vector<128x512xbf16>
    %c0_13 = arith.constant 0 : index
    %c0_14 = arith.constant 0 : index
    %25 = vector.load %arg8[%c0_13, %c0_14] : memref<8x128xbf16, #tpu.memory_space<vmem>>, vector<8x128xbf16>
    %c0_15 = arith.constant 0 : index
    %c0_16 = arith.constant 0 : index
    %26 = vector.load %arg9[%c0_15, %c0_16] : memref<8x128xf32, #tpu.memory_space<vmem>>, vector<8x128xf32>
    %27 = arith.index_cast %10 : i32 to index
    %c0_17 = arith.constant 0 : index
    %c0_18 = arith.constant 0 : index
    %28 = vector.load %arg10[%27, %c0_17, %c0_18] : memref<2x64x512xf32, #tpu.memory_space<vmem>>, vector<1x8x512xf32>
    %29 = vector.shape_cast %28 : vector<1x8x512xf32> to vector<8x512xf32>
    %cst = arith.constant dense<0.000000e+00> : vector<8x512xf32>
    %30 = tpu.matmul %25, %24, %cst {dimension_numbers = #tpu.dot_dimension_numbers<[1], [0], [0], [1], [0, 0, 1, 1], [], []>} : vector<8x128xbf16>, vector<128x512xbf16>, vector<8x512xf32> -> vector<8x512xf32>
    %31 = arith.addf %29, %30 : vector<8x512xf32>
    %32 = vector.extract_strided_slice %31 {offsets = [0, 0], sizes = [8, 384], strides = [1, 1]} : vector<8x512xf32> to vector<8x384xf32>
    %33 = arith.negf %32 : vector<8x384xf32>
    %34 = math.exp %33 : vector<8x384xf32>
    %cst_19 = arith.constant 1.000000e+00 : f32
    %35 = vector.broadcast %cst_19 : f32 to vector<8x384xf32>
    %36 = arith.addf %35, %34 : vector<8x384xf32>
    %37 = arith.divf %35, %36 : vector<8x384xf32>
    %38 = vector.extract_strided_slice %37 {offsets = [0, 0], sizes = [8, 128], strides = [1, 1]} : vector<8x384xf32> to vector<8x128xf32>
    %39 = vector.extract_strided_slice %37 {offsets = [0, 128], sizes = [8, 128], strides = [1, 1]} : vector<8x384xf32> to vector<8x128xf32>
    %40 = vector.extract_strided_slice %37 {offsets = [0, 256], sizes = [8, 128], strides = [1, 1]} : vector<8x384xf32> to vector<8x128xf32>
    %41 = vector.extract_strided_slice %31 {offsets = [0, 384], sizes = [8, 128], strides = [1, 1]} : vector<8x512xf32> to vector<8x128xf32>
    %42 = math.tanh %41 : vector<8x128xf32>
    %43 = arith.mulf %39, %26 : vector<8x128xf32>
    %44 = arith.mulf %38, %42 : vector<8x128xf32>
    %45 = arith.addf %43, %44 : vector<8x128xf32>
    %46 = math.tanh %45 : vector<8x128xf32>
    %47 = arith.mulf %40, %46 : vector<8x128xf32>
    %48 = arith.truncf %47 : vector<8x128xf32> to vector<8x128xbf16>
    %49 = arith.index_cast %10 : i32 to index
    %c8 = arith.constant 8 : index
    %c0_20 = arith.constant 0 : index
    %50 = vector.load %arg10[%49, %c8, %c0_20] : memref<2x64x512xf32, #tpu.memory_space<vmem>>, vector<1x8x512xf32>
    %51 = vector.shape_cast %50 : vector<1x8x512xf32> to vector<8x512xf32>
    %cst_21 = arith.constant dense<0.000000e+00> : vector<8x512xf32>
    %52 = tpu.matmul %48, %24, %cst_21 {dimension_numbers = #tpu.dot_dimension_numbers<[1], [0], [0], [1], [0, 0, 1, 1], [], []>} : vector<8x128xbf16>, vector<128x512xbf16>, vector<8x512xf32> -> vector<8x512xf32>
    %53 = arith.addf %51, %52 : vector<8x512xf32>
    %54 = vector.extract_strided_slice %53 {offsets = [0, 0], sizes = [8, 384], strides = [1, 1]} : vector<8x512xf32> to vector<8x384xf32>
    %55 = arith.negf %54 : vector<8x384xf32>
    %56 = math.exp %55 : vector<8x384xf32>
    %cst_22 = arith.constant 1.000000e+00 : f32
    %57 = vector.broadcast %cst_22 : f32 to vector<8x384xf32>
    %58 = arith.addf %57, %56 : vector<8x384xf32>
    %59 = arith.divf %57, %58 : vector<8x384xf32>
    %60 = vector.extract_strided_slice %59 {offsets = [0, 0], sizes = [8, 128], strides = [1, 1]} : vector<8x384xf32> to vector<8x128xf32>
    %61 = vector.extract_strided_slice %59 {offsets = [0, 128], sizes = [8, 128], strides = [1, 1]} : vector<8x384xf32> to vector<8x128xf32>
    %62 = vector.extract_strided_slice %59 {offsets = [0, 256], sizes = [8, 128], strides = [1, 1]} : vector<8x384xf32> to vector<8x128xf32>
    %63 = vector.extract_strided_slice %53 {offsets = [0, 384], sizes = [8, 128], strides = [1, 1]} : vector<8x512xf32> to vector<8x128xf32>
    %64 = math.tanh %63 : vector<8x128xf32>
    %65 = arith.mulf %61, %45 : vector<8x128xf32>
    %66 = arith.mulf %60, %64 : vector<8x128xf32>
    %67 = arith.addf %65, %66 : vector<8x128xf32>
    %68 = math.tanh %67 : vector<8x128xf32>
    %69 = arith.mulf %62, %68 : vector<8x128xf32>
    %70 = arith.truncf %69 : vector<8x128xf32> to vector<8x128xbf16>
    %71 = arith.index_cast %10 : i32 to index
    %c16 = arith.constant 16 : index
    %c0_23 = arith.constant 0 : index
    %72 = vector.load %arg10[%71, %c16, %c0_23] : memref<2x64x512xf32, #tpu.memory_space<vmem>>, vector<1x8x512xf32>
    %73 = vector.shape_cast %72 : vector<1x8x512xf32> to vector<8x512xf32>
    %cst_24 = arith.constant dense<0.000000e+00> : vector<8x512xf32>
    %74 = tpu.matmul %70, %24, %cst_24 {dimension_numbers = #tpu.dot_dimension_numbers<[1], [0], [0], [1], [0, 0, 1, 1], [], []>} : vector<8x128xbf16>, vector<128x512xbf16>, vector<8x512xf32> -> vector<8x512xf32>
    %75 = arith.addf %73, %74 : vector<8x512xf32>
    %76 = vector.extract_strided_slice %75 {offsets = [0, 0], sizes = [8, 384], strides = [1, 1]} : vector<8x512xf32> to vector<8x384xf32>
    %77 = arith.negf %76 : vector<8x384xf32>
    %78 = math.exp %77 : vector<8x384xf32>
    %cst_25 = arith.constant 1.000000e+00 : f32
    %79 = vector.broadcast %cst_25 : f32 to vector<8x384xf32>
    %80 = arith.addf %79, %78 : vector<8x384xf32>
    %81 = arith.divf %79, %80 : vector<8x384xf32>
    %82 = vector.extract_strided_slice %81 {offsets = [0, 0], sizes = [8, 128], strides = [1, 1]} : vector<8x384xf32> to vector<8x128xf32>
    %83 = vector.extract_strided_slice %81 {offsets = [0, 128], sizes = [8, 128], strides = [1, 1]} : vector<8x384xf32> to vector<8x128xf32>
    %84 = vector.extract_strided_slice %81 {offsets = [0, 256], sizes = [8, 128], strides = [1, 1]} : vector<8x384xf32> to vector<8x128xf32>
    %85 = vector.extract_strided_slice %75 {offsets = [0, 384], sizes = [8, 128], strides = [1, 1]} : vector<8x512xf32> to vector<8x128xf32>
    %86 = math.tanh %85 : vector<8x128xf32>
    %87 = arith.mulf %83, %67 : vector<8x128xf32>
    %88 = arith.mulf %82, %86 : vector<8x128xf32>
    %89 = arith.addf %87, %88 : vector<8x128xf32>
    %90 = math.tanh %89 : vector<8x128xf32>
    %91 = arith.mulf %84, %90 : vector<8x128xf32>
    %92 = arith.truncf %91 : vector<8x128xf32> to vector<8x128xbf16>
    %93 = arith.index_cast %10 : i32 to index
    %c24 = arith.constant 24 : index
    %c0_26 = arith.constant 0 : index
    %94 = vector.load %arg10[%93, %c24, %c0_26] : memref<2x64x512xf32, #tpu.memory_space<vmem>>, vector<1x8x512xf32>
    %95 = vector.shape_cast %94 : vector<1x8x512xf32> to vector<8x512xf32>
    %cst_27 = arith.constant dense<0.000000e+00> : vector<8x512xf32>
    %96 = tpu.matmul %92, %24, %cst_27 {dimension_numbers = #tpu.dot_dimension_numbers<[1], [0], [0], [1], [0, 0, 1, 1], [], []>} : vector<8x128xbf16>, vector<128x512xbf16>, vector<8x512xf32> -> vector<8x512xf32>
    %97 = arith.addf %95, %96 : vector<8x512xf32>
    %98 = vector.extract_strided_slice %97 {offsets = [0, 0], sizes = [8, 384], strides = [1, 1]} : vector<8x512xf32> to vector<8x384xf32>
    %99 = arith.negf %98 : vector<8x384xf32>
    %100 = math.exp %99 : vector<8x384xf32>
    %cst_28 = arith.constant 1.000000e+00 : f32
    %101 = vector.broadcast %cst_28 : f32 to vector<8x384xf32>
    %102 = arith.addf %101, %100 : vector<8x384xf32>
    %103 = arith.divf %101, %102 : vector<8x384xf32>
    %104 = vector.extract_strided_slice %103 {offsets = [0, 0], sizes = [8, 128], strides = [1, 1]} : vector<8x384xf32> to vector<8x128xf32>
    %105 = vector.extract_strided_slice %103 {offsets = [0, 128], sizes = [8, 128], strides = [1, 1]} : vector<8x384xf32> to vector<8x128xf32>
    %106 = vector.extract_strided_slice %103 {offsets = [0, 256], sizes = [8, 128], strides = [1, 1]} : vector<8x384xf32> to vector<8x128xf32>
    %107 = vector.extract_strided_slice %97 {offsets = [0, 384], sizes = [8, 128], strides = [1, 1]} : vector<8x512xf32> to vector<8x128xf32>
    %108 = math.tanh %107 : vector<8x128xf32>
    %109 = arith.mulf %105, %89 : vector<8x128xf32>
    %110 = arith.mulf %104, %108 : vector<8x128xf32>
    %111 = arith.addf %109, %110 : vector<8x128xf32>
    %112 = math.tanh %111 : vector<8x128xf32>
    %113 = arith.mulf %106, %112 : vector<8x128xf32>
    %114 = arith.truncf %113 : vector<8x128xf32> to vector<8x128xbf16>
    %115 = arith.index_cast %10 : i32 to index
    %c32 = arith.constant 32 : index
    %c0_29 = arith.constant 0 : index
    %116 = vector.load %arg10[%115, %c32, %c0_29] : memref<2x64x512xf32, #tpu.memory_space<vmem>>, vector<1x8x512xf32>
    %117 = vector.shape_cast %116 : vector<1x8x512xf32> to vector<8x512xf32>
    %cst_30 = arith.constant dense<0.000000e+00> : vector<8x512xf32>
    %118 = tpu.matmul %114, %24, %cst_30 {dimension_numbers = #tpu.dot_dimension_numbers<[1], [0], [0], [1], [0, 0, 1, 1], [], []>} : vector<8x128xbf16>, vector<128x512xbf16>, vector<8x512xf32> -> vector<8x512xf32>
    %119 = arith.addf %117, %118 : vector<8x512xf32>
    %120 = vector.extract_strided_slice %119 {offsets = [0, 0], sizes = [8, 384], strides = [1, 1]} : vector<8x512xf32> to vector<8x384xf32>
    %121 = arith.negf %120 : vector<8x384xf32>
    %122 = math.exp %121 : vector<8x384xf32>
    %cst_31 = arith.constant 1.000000e+00 : f32
    %123 = vector.broadcast %cst_31 : f32 to vector<8x384xf32>
    %124 = arith.addf %123, %122 : vector<8x384xf32>
    %125 = arith.divf %123, %124 : vector<8x384xf32>
    %126 = vector.extract_strided_slice %125 {offsets = [0, 0], sizes = [8, 128], strides = [1, 1]} : vector<8x384xf32> to vector<8x128xf32>
    %127 = vector.extract_strided_slice %125 {offsets = [0, 128], sizes = [8, 128], strides = [1, 1]} : vector<8x384xf32> to vector<8x128xf32>
    %128 = vector.extract_strided_slice %125 {offsets = [0, 256], sizes = [8, 128], strides = [1, 1]} : vector<8x384xf32> to vector<8x128xf32>
    %129 = vector.extract_strided_slice %119 {offsets = [0, 384], sizes = [8, 128], strides = [1, 1]} : vector<8x512xf32> to vector<8x128xf32>
    %130 = math.tanh %129 : vector<8x128xf32>
    %131 = arith.mulf %127, %111 : vector<8x128xf32>
    %132 = arith.mulf %126, %130 : vector<8x128xf32>
    %133 = arith.addf %131, %132 : vector<8x128xf32>
    %134 = math.tanh %133 : vector<8x128xf32>
    %135 = arith.mulf %128, %134 : vector<8x128xf32>
    %136 = arith.truncf %135 : vector<8x128xf32> to vector<8x128xbf16>
    %137 = arith.index_cast %10 : i32 to index
    %c40 = arith.constant 40 : index
    %c0_32 = arith.constant 0 : index
    %138 = vector.load %arg10[%137, %c40, %c0_32] : memref<2x64x512xf32, #tpu.memory_space<vmem>>, vector<1x8x512xf32>
    %139 = vector.shape_cast %138 : vector<1x8x512xf32> to vector<8x512xf32>
    %cst_33 = arith.constant dense<0.000000e+00> : vector<8x512xf32>
    %140 = tpu.matmul %136, %24, %cst_33 {dimension_numbers = #tpu.dot_dimension_numbers<[1], [0], [0], [1], [0, 0, 1, 1], [], []>} : vector<8x128xbf16>, vector<128x512xbf16>, vector<8x512xf32> -> vector<8x512xf32>
    %141 = arith.addf %139, %140 : vector<8x512xf32>
    %142 = vector.extract_strided_slice %141 {offsets = [0, 0], sizes = [8, 384], strides = [1, 1]} : vector<8x512xf32> to vector<8x384xf32>
    %143 = arith.negf %142 : vector<8x384xf32>
    %144 = math.exp %143 : vector<8x384xf32>
    %cst_34 = arith.constant 1.000000e+00 : f32
    %145 = vector.broadcast %cst_34 : f32 to vector<8x384xf32>
    %146 = arith.addf %145, %144 : vector<8x384xf32>
    %147 = arith.divf %145, %146 : vector<8x384xf32>
    %148 = vector.extract_strided_slice %147 {offsets = [0, 0], sizes = [8, 128], strides = [1, 1]} : vector<8x384xf32> to vector<8x128xf32>
    %149 = vector.extract_strided_slice %147 {offsets = [0, 128], sizes = [8, 128], strides = [1, 1]} : vector<8x384xf32> to vector<8x128xf32>
    %150 = vector.extract_strided_slice %147 {offsets = [0, 256], sizes = [8, 128], strides = [1, 1]} : vector<8x384xf32> to vector<8x128xf32>
    %151 = vector.extract_strided_slice %141 {offsets = [0, 384], sizes = [8, 128], strides = [1, 1]} : vector<8x512xf32> to vector<8x128xf32>
    %152 = math.tanh %151 : vector<8x128xf32>
    %153 = arith.mulf %149, %133 : vector<8x128xf32>
    %154 = arith.mulf %148, %152 : vector<8x128xf32>
    %155 = arith.addf %153, %154 : vector<8x128xf32>
    %156 = math.tanh %155 : vector<8x128xf32>
    %157 = arith.mulf %150, %156 : vector<8x128xf32>
    %158 = arith.truncf %157 : vector<8x128xf32> to vector<8x128xbf16>
    %159 = arith.index_cast %10 : i32 to index
    %c48 = arith.constant 48 : index
    %c0_35 = arith.constant 0 : index
    %160 = vector.load %arg10[%159, %c48, %c0_35] : memref<2x64x512xf32, #tpu.memory_space<vmem>>, vector<1x8x512xf32>
    %161 = vector.shape_cast %160 : vector<1x8x512xf32> to vector<8x512xf32>
    %cst_36 = arith.constant dense<0.000000e+00> : vector<8x512xf32>
    %162 = tpu.matmul %158, %24, %cst_36 {dimension_numbers = #tpu.dot_dimension_numbers<[1], [0], [0], [1], [0, 0, 1, 1], [], []>} : vector<8x128xbf16>, vector<128x512xbf16>, vector<8x512xf32> -> vector<8x512xf32>
    %163 = arith.addf %161, %162 : vector<8x512xf32>
    %164 = vector.extract_strided_slice %163 {offsets = [0, 0], sizes = [8, 384], strides = [1, 1]} : vector<8x512xf32> to vector<8x384xf32>
    %165 = arith.negf %164 : vector<8x384xf32>
    %166 = math.exp %165 : vector<8x384xf32>
    %cst_37 = arith.constant 1.000000e+00 : f32
    %167 = vector.broadcast %cst_37 : f32 to vector<8x384xf32>
    %168 = arith.addf %167, %166 : vector<8x384xf32>
    %169 = arith.divf %167, %168 : vector<8x384xf32>
    %170 = vector.extract_strided_slice %169 {offsets = [0, 0], sizes = [8, 128], strides = [1, 1]} : vector<8x384xf32> to vector<8x128xf32>
    %171 = vector.extract_strided_slice %169 {offsets = [0, 128], sizes = [8, 128], strides = [1, 1]} : vector<8x384xf32> to vector<8x128xf32>
    %172 = vector.extract_strided_slice %169 {offsets = [0, 256], sizes = [8, 128], strides = [1, 1]} : vector<8x384xf32> to vector<8x128xf32>
    %173 = vector.extract_strided_slice %163 {offsets = [0, 384], sizes = [8, 128], strides = [1, 1]} : vector<8x512xf32> to vector<8x128xf32>
    %174 = math.tanh %173 : vector<8x128xf32>
    %175 = arith.mulf %171, %155 : vector<8x128xf32>
    %176 = arith.mulf %170, %174 : vector<8x128xf32>
    %177 = arith.addf %175, %176 : vector<8x128xf32>
    %178 = math.tanh %177 : vector<8x128xf32>
    %179 = arith.mulf %172, %178 : vector<8x128xf32>
    %180 = arith.truncf %179 : vector<8x128xf32> to vector<8x128xbf16>
    %181 = arith.index_cast %10 : i32 to index
    %c56 = arith.constant 56 : index
    %c0_38 = arith.constant 0 : index
    %182 = vector.load %arg10[%181, %c56, %c0_38] : memref<2x64x512xf32, #tpu.memory_space<vmem>>, vector<1x8x512xf32>
    %183 = vector.shape_cast %182 : vector<1x8x512xf32> to vector<8x512xf32>
    %cst_39 = arith.constant dense<0.000000e+00> : vector<8x512xf32>
    %184 = tpu.matmul %180, %24, %cst_39 {dimension_numbers = #tpu.dot_dimension_numbers<[1], [0], [0], [1], [0, 0, 1, 1], [], []>} : vector<8x128xbf16>, vector<128x512xbf16>, vector<8x512xf32> -> vector<8x512xf32>
    %185 = arith.addf %183, %184 : vector<8x512xf32>
    %186 = vector.extract_strided_slice %185 {offsets = [0, 0], sizes = [8, 384], strides = [1, 1]} : vector<8x512xf32> to vector<8x384xf32>
    %187 = arith.negf %186 : vector<8x384xf32>
    %188 = math.exp %187 : vector<8x384xf32>
    %cst_40 = arith.constant 1.000000e+00 : f32
    %189 = vector.broadcast %cst_40 : f32 to vector<8x384xf32>
    %190 = arith.addf %189, %188 : vector<8x384xf32>
    %191 = arith.divf %189, %190 : vector<8x384xf32>
    %192 = vector.extract_strided_slice %191 {offsets = [0, 0], sizes = [8, 128], strides = [1, 1]} : vector<8x384xf32> to vector<8x128xf32>
    %193 = vector.extract_strided_slice %191 {offsets = [0, 128], sizes = [8, 128], strides = [1, 1]} : vector<8x384xf32> to vector<8x128xf32>
    %194 = vector.extract_strided_slice %191 {offsets = [0, 256], sizes = [8, 128], strides = [1, 1]} : vector<8x384xf32> to vector<8x128xf32>
    %195 = vector.extract_strided_slice %185 {offsets = [0, 384], sizes = [8, 128], strides = [1, 1]} : vector<8x512xf32> to vector<8x128xf32>
    %196 = math.tanh %195 : vector<8x128xf32>
    %197 = arith.mulf %193, %177 : vector<8x128xf32>
    %198 = arith.mulf %192, %196 : vector<8x128xf32>
    %199 = arith.addf %197, %198 : vector<8x128xf32>
    %200 = math.tanh %199 : vector<8x128xf32>
    %201 = arith.mulf %194, %200 : vector<8x128xf32>
    %202 = arith.truncf %201 : vector<8x128xf32> to vector<8x128xbf16>
    %c0_41 = arith.constant 0 : index
    %c0_42 = arith.constant 0 : index
    %203 = vector.load %arg8[%c0_41, %c0_42] : memref<8x128xbf16, #tpu.memory_space<vmem>>, vector<8x128xbf16>
    tpu.vector_store %arg8[%c0_41, %c0_42], %202 {strides = array<i32>} : memref<8x128xbf16, #tpu.memory_space<vmem>>, vector<8x128xbf16>,
    %c0_43 = arith.constant 0 : index
    %c0_44 = arith.constant 0 : index
    %204 = vector.load %arg9[%c0_43, %c0_44] : memref<8x128xf32, #tpu.memory_space<vmem>>, vector<8x128xf32>
    tpu.vector_store %arg9[%c0_43, %c0_44], %199 {strides = array<i32>} : memref<8x128xf32, #tpu.memory_space<vmem>>, vector<8x128xf32>,
    %c0_45 = arith.constant 0 : index
    %c0_46 = arith.constant 0 : index
    %205 = vector.load %arg1[%c0_45, %c0_46] : memref<64x32xbf16, #tpu.memory_space<vmem>>, vector<64x32xbf16>
    %c0_47 = arith.constant 0 : index
    %c0_48 = arith.constant 0 : index
    %206 = vector.load %arg2[%c0_47, %c0_48] : memref<32x512xbf16, #tpu.memory_space<vmem>>, vector<32x512xbf16>
    %cst_49 = arith.constant dense<0.000000e+00> : vector<64x512xf32>
    %207 = tpu.matmul %205, %206, %cst_49 {dimension_numbers = #tpu.dot_dimension_numbers<[1], [0], [0], [1], [0, 0, 1, 1], [], []>} : vector<64x32xbf16>, vector<32x512xbf16>, vector<64x512xf32> -> vector<64x512xf32>
    %c0_50 = arith.constant 0 : index
    %c0_51 = arith.constant 0 : index
    %208 = vector.load %arg4[%c0_50, %c0_51] : memref<1x512xf32, #tpu.memory_space<vmem>>, vector<1x512xf32>
    %209 = vector.broadcast %208 : vector<1x512xf32> to vector<64x512xf32>
    %210 = arith.addf %207, %209 : vector<64x512xf32>
    %211 = arith.index_cast %20 : i32 to index
    %c0_52 = arith.constant 0 : index
    %c0_53 = arith.constant 0 : index
    %212 = vector.load %arg10[%211, %c0_52, %c0_53] : memref<2x64x512xf32, #tpu.memory_space<vmem>>, vector<1x64x512xf32>
    %213 = vector.shape_cast %212 : vector<1x64x512xf32> to vector<64x512xf32>
    %214 = vector.shape_cast %210 : vector<64x512xf32> to vector<1x64x512xf32>
    tpu.vector_store %arg10[%211, %c0_52, %c0_53], %214 {strides = array<i32>} : memref<2x64x512xf32, #tpu.memory_space<vmem>>, vector<1x64x512xf32>,
    %c1_i32_54 = arith.constant 1 : i32
    %215 = arith.cmpi eq, %arg0, %c1_i32_54 : i32
    %216 = arith.extui %215 : i1 to i32
    %c0_i32_55 = arith.constant 0 : i32
    %217 = arith.cmpi ne, %216, %c0_i32_55 : i32
    scf.if %217 {
      %c0_56 = arith.constant 0 : index
      %c0_57 = arith.constant 0 : index
      %218 = vector.load %arg8[%c0_56, %c0_57] : memref<8x128xbf16, #tpu.memory_space<vmem>>, vector<8x128xbf16>
      %c0_58 = arith.constant 0 : index
      %c0_59 = arith.constant 0 : index
      %219 = vector.load %arg5[%c0_58, %c0_59] : memref<128x512xbf16, #tpu.memory_space<vmem>>, vector<128x512xbf16>
      %cst_60 = arith.constant dense<0.000000e+00> : vector<8x512xf32>
      %220 = tpu.matmul %218, %219, %cst_60 {dimension_numbers = #tpu.dot_dimension_numbers<[1], [0], [0], [1], [0, 0, 1, 1], [], []>} : vector<8x128xbf16>, vector<128x512xbf16>, vector<8x512xf32> -> vector<8x512xf32>
      %c0_61 = arith.constant 0 : index
      %c0_62 = arith.constant 0 : index
      %221 = vector.load %arg6[%c0_61, %c0_62] : memref<1x512xf32, #tpu.memory_space<vmem>>, vector<1x512xf32>
      %222 = vector.broadcast %221 : vector<1x512xf32> to vector<8x512xf32>
      %223 = arith.addf %220, %222 : vector<8x512xf32>
      %c0_63 = arith.constant 0 : index
      %c0_64 = arith.constant 0 : index
      %224 = vector.load %arg7[%c0_63, %c0_64] : memref<8x512xf32, #tpu.memory_space<vmem>>, vector<8x512xf32>
      tpu.vector_store %arg7[%c0_63, %c0_64], %223 {strides = array<i32>} : memref<8x512xf32, #tpu.memory_space<vmem>>, vector<8x512xf32>,
    } else {
    }
    return
  }
  func.func @transform_0(%arg0: i32) -> (i32, i32) {
    %c0_i32 = arith.constant 0 : i32
    %0 = arith.minsi %arg0, %c0_i32 : i32
    %c0_i32_0 = arith.constant 0 : i32
    %c0_i32_1 = arith.constant 0 : i32
    return %0, %c0_i32_0 : i32, i32
  }
  func.func @transform_1(%arg0: i32) -> (i32, i32) {
    %c0_i32 = arith.constant 0 : i32
    %c0_i32_0 = arith.constant 0 : i32
    %c0_i32_1 = arith.constant 0 : i32
    return %c0_i32, %c0_i32_0 : i32, i32
  }
  func.func @transform_2(%arg0: i32) -> (i32, i32) {
    %c0_i32 = arith.constant 0 : i32
    %c0_i32_0 = arith.constant 0 : i32
    %c0_i32_1 = arith.constant 0 : i32
    return %c0_i32, %c0_i32_0 : i32, i32
  }
  func.func @transform_3(%arg0: i32) -> (i32, i32) {
    %c0_i32 = arith.constant 0 : i32
    %c0_i32_0 = arith.constant 0 : i32
    %c0_i32_1 = arith.constant 0 : i32
    return %c0_i32, %c0_i32_0 : i32, i32
  }
  func.func @transform_4(%arg0: i32) -> (i32, i32) {
    %c0_i32 = arith.constant 0 : i32
    %c0_i32_0 = arith.constant 0 : i32
    %c0_i32_1 = arith.constant 0 : i32
    return %c0_i32, %c0_i32_0 : i32, i32
  }
  func.func @transform_5(%arg0: i32) -> (i32, i32) {
    %c0_i32 = arith.constant 0 : i32
    %c0_i32_0 = arith.constant 0 : i32
    %c0_i32_1 = arith.constant 0 : i32
    return %c0_i32, %c0_i32_0 : i32, i32
  }
  func.func @transform_6(%arg0: i32) -> (i32, i32) {
    %c0_i32 = arith.constant 0 : i32
    %c0_i32_0 = arith.constant 0 : i32
    %c0_i32_1 = arith.constant 0 : i32
    return %c0_i32, %c0_i32_0 : i32, i32
  }
}

</mosaic_0001>

<bundles_post_ra>
// kernel: tpu_custom_call.1
= control target key start
LH: loop header
LB: loop body
LE: loop exit
PB: predicated region body
PF: predicated region fallthrough
CT: control target
= control target key end

     0   :  { %11 = vsyncpa [#allocation6], 0  ;;  %s3558_s0 = inlined_call_operand.vmem [shape: bf16[64,32], index: 0, kind: input, shape index: {}]   ;;  %s3559_s1 = inlined_call_operand.hbm [shape: bf16[32,512], index: 1, kind: input, shape index: {}]   ;;  %s3560_s2 = inlined_call_operand.hbm [shape: bf16[128,512], index: 2, kind: input, shape index: {}]   ;;  %s3561_s3 = inlined_call_operand.vmem [shape: f32[1,512], index: 3, kind: input, shape index: {}]   ;;  %s3562_s4 = inlined_call_operand.hbm [shape: bf16[128,512], index: 4, kind: input, shape index: {}]   ;;  %s3563_s5 = inlined_call_operand.vmem [shape: f32[1,512], index: 5, kind: input, shape index: {}]   ;;  %s3564_s6 = inlined_call_operand.hbm [shape: f32[8,512], index: 6, kind: output, shape index: {}]  }
   0x1   :  { %12 = vsyncpa [#allocation9], 0 }
   0x2   :  { %13 = vsyncpa [#allocation7], 0  ;;  %s2965_s21 = smov 0  }
   0x3 LB: > { %s2971_s22 = sadd.s32 4294967295, %s2920_s21   ;;  %p2157_p0 = scmp.ge.s32.totalorder %s2920_s21, 1  ;;  %s2920_s21 = sphi %s2965_s21, %s19_s21  }
   0x4   : > { %p180_p1 = scmp.lt.s32.totalorder %s2920_s21, 3  ;;  %p2158_p2 = scmp.ne.s32.totalorder %s2971_s22, 0 }
   0x5   : > { %p2632_p3 = scmp.eq.s32.totalorder %s2971_s22, 0  ;;  %s205_s25 = sshll.u32 %s3560_s2, 4  ;;  %s206_s25 = int_to_ptr.hbm [resolvable:$true] %s205_s25 }
   0x6   : > { %p2980_p4 = pnand %p2157_p0, %p180_p1  ;;  %s191_s29 = sshll.u32 %s3559_s1, 4  ;;  %s192_s29 = int_to_ptr.hbm [resolvable:$true] %s191_s29 }
   0x7   : > { %s2922_s30 = smov [#allocation8]   ;;  %s2923_s8 = smov [#allocation5]  }
   0x8   : > { %p2622_p5 = pneg %p2980_p4  ;;  %s207_s7 = sshll.u32 %s2922_s30, 4  ;;  %s208_s7 = int_to_ptr.vmem [resolvable:$true] %s207_s7 }
   0x9   : > { %s193_s9 = sshll.u32 %s2923_s8, 4  ;;  %s222_s12 = sshll.u32 %s3562_s4, 4  ;;  %s194_s9 = int_to_ptr.vmem [resolvable:$true] %s193_s9  ;;  %s223_s12 = int_to_ptr.hbm [resolvable:$true] %s222_s12 }
   0xa   : > { %p2623_p6 = pnand %p2632_p3, %p2622_p5  ;;  %s2924_s13 = smov 256  }
   0xb   : > { %s2925_s14 = smov 16   ;;  %s2926_s15 = smov [#allocation10]  }
   0xc   : > { %2628 = dma.hbm_to_vmem [thread:$0]  (!%p2623_p6), %s206_s25, 4096, %s208_s7, [#allocation9], %s2924_s13, %s2924_s13, %s2925_s14  }
   0xd   : > { %2625 = dma.hbm_to_vmem [thread:$0]  (!%p2623_p6), %s192_s29, 1024, %s194_s9, [#allocation6], %s2924_s13, %s2924_s13, %s2925_s14  }
   0xe   : > { %s224_s16 = sshll.u32 %s2926_s15, 4  ;;  %256 = sbr.rel (%p2980_p4) target bundleno = 1702 (0x6a6), region = 44  ;;  %s225_s16 = int_to_ptr.vmem [resolvable:$true] %s224_s16 }
   0xf   : > { %2631 = dma.hbm_to_vmem [thread:$0]  (!%p2623_p6), %s223_s12, 4096, %s225_s16, [#allocation9], %s2924_s13, %s2924_s13, %s2925_s14  }
  0x13   : > { %2907 = dma.done.wait (%p2632_p3), [#allocation6], 1024  }
  0x14   : > { %2909 = vsyncadd (%p2632_p3), [#allocation6], 4294966272 }
  0x15   : > { %2911 = dma.done.wait (%p2632_p3), [#allocation9], 8192  }
  0x16   : > { %2913 = vsyncadd (%p2632_p3), [#allocation9], 4294959104  ;;  %p294_p7 = scmp.lt.s32.totalorder %s2971_s22, 0  ;;  %s305_s17 = sadd.s32 1, %s2971_s22 }
  0x17   : > { %p306_p8 = scmp.lt.s32.totalorder %s305_s17, 0  ;;  %s307_s18 = ssub.s32 0, %s305_s17 }
  0x18   : > { %s295_s19 = scalar_select %p294_p7, %s2971_s22, 0 }
  0x19   : > { %s2168_s20 = smin.u32 %s307_s18, %s305_s17  ;;  %s319_s23 = ssub.s32 0, %s2971_s22 }
  0x1a   : > { %s2166_s24 = sshll.u32 %s295_s19, 3  ;;  %s309_s25 = sand.u32 1, %s2168_s20  }
  0x1b   : > { %p297_p9 = scmp.lt.s32.totalorder %s2166_s24, 7  ;;  %s310_s26 = ssub.s32 0, %s309_s25 }
  0x1c   : > { %s3567_s26 = smov (!%p306_p8, %s310_s26), %s309_s25  ;;  %s2171_s29 = smin.u32 %s2971_s22, %s319_s23 }
  0x1d   : > { %s3569_s24 = smov (!%p297_p9, %s2166_s24), 7  ;;  %p2170_p10 = scmp.lt.s32.totalorder %s3567_s26, 0 }
  0x1e   : > { %s316_s27 = sadd.s32 2, %s3567_s26  ;;  %s2167_s28 = sshll.u32 %s3569_s24, 2 }
  0x1f   : > { %s3014_s8 = scalar_lea.vmem %s3558_s0, %s2167_s28  ;;  %s321_s9 = sand.u32 1, %s2171_s29  }
  0x20   : > { %s3571_s27 = smov (!%p2170_p10, %s316_s27), %s3567_s26  ;;  %s322_s10 = ssub.s32 0, %s321_s9 }
  0x21   : > { %s3573_s10 = smov (!%p294_p7, %s322_s10), %s321_s9  ;;  %333 = sbr.rel (%p2158_p2) target bundleno = 73 (0x49), region = 60 }
  0x22   : > { %p2173_p11 = scmp.lt.s32.totalorder %s3573_s10, 0  ;;  %s328_s11 = sadd.s32 2, %s3573_s10 }
  0x24   : > { %s3575_s11 = smov (!%p2173_p11, %s328_s11), %s3573_s10 }
  0x26   : > { %v2927_v0 = vmov 0   ;;  %v2928_v1 = vmov 0.0  }
  0x27   : > { %334 = vst [vmem:[#allocation2] sm:$0xf] %v2927_v0 }
  0x28   : > { %335 = vst [vmem:[#allocation3] sm:$0xff] %v2928_v1 }
  0x29   : > { %337 = vst [vmem:[#allocation4 + $0x100] sm:$0xff] %v2928_v1 }
  0x2a   : > { %338 = vst [vmem:[#allocation4 + $0x108] sm:$0xff] %v2928_v1 }
  0x2b   : > { %339 = vst [vmem:[#allocation4 + $0x110] sm:$0xff] %v2928_v1 }
  0x2c   : > { %340 = vst [vmem:[#allocation4 + $0x118] sm:$0xff] %v2928_v1 }
  0x2d   : > { %341 = vst [vmem:[#allocation4 + $0x120] sm:$0xff] %v2928_v1 }
  0x2e   : > { %342 = vst [vmem:[#allocation4 + $0x128] sm:$0xff] %v2928_v1 }
  0x2f   : > { %343 = vst [vmem:[#allocation4 + $0x130] sm:$0xff] %v2928_v1 }
  0x30   : > { %344 = vst [vmem:[#allocation4 + $0x138] sm:$0xff] %v2928_v1 }
  0x31   : > { %345 = vst [vmem:[#allocation4 + $0x140] sm:$0xff] %v2928_v1 }
  0x32   : > { %346 = vst [vmem:[#allocation4 + $0x148] sm:$0xff] %v2928_v1 }
  0x33   : > { %347 = vst [vmem:[#allocation4 + $0x150] sm:$0xff] %v2928_v1 }
  0x34   : > { %348 = vst [vmem:[#allocation4 + $0x158] sm:$0xff] %v2928_v1 }
  0x35   : > { %349 = vst [vmem:[#allocation4 + $0x160] sm:$0xff] %v2928_v1 }
  0x36   : > { %350 = vst [vmem:[#allocation4 + $0x168] sm:$0xff] %v2928_v1 }
  0x37   : > { %351 = vst [vmem:[#allocation4 + $0x170] sm:$0xff] %v2928_v1 }
  0x38   : > { %352 = vst [vmem:[#allocation4 + $0x178] sm:$0xff] %v2928_v1 }
  0x39   : > { %353 = vst [vmem:[#allocation4 + $0x180] sm:$0xff] %v2928_v1 }
  0x3a   : > { %354 = vst [vmem:[#allocation4 + $0x188] sm:$0xff] %v2928_v1 }
  0x3b   : > { %355 = vst [vmem:[#allocation4 + $0x190] sm:$0xff] %v2928_v1 }
  0x3c   : > { %356 = vst [vmem:[#allocation4 + $0x198] sm:$0xff] %v2928_v1 }
  0x3d   : > { %357 = vst [vmem:[#allocation4 + $0x1a0] sm:$0xff] %v2928_v1 }
  0x3e   : > { %358 = vst [vmem:[#allocation4 + $0x1a8] sm:$0xff] %v2928_v1 }
  0x3f   : > { %359 = vst [vmem:[#allocation4 + $0x1b0] sm:$0xff] %v2928_v1 }
  0x40   : > { %360 = vst [vmem:[#allocation4 + $0x1b8] sm:$0xff] %v2928_v1 }
  0x41   : > { %361 = vst [vmem:[#allocation4 + $0x1c0] sm:$0xff] %v2928_v1 }
  0x42   : > { %362 = vst [vmem:[#allocation4 + $0x1c8] sm:$0xff] %v2928_v1 }
  0x43   : > { %363 = vst [vmem:[#allocation4 + $0x1d0] sm:$0xff] %v2928_v1 }
  0x44   : > { %364 = vst [vmem:[#allocation4 + $0x1d8] sm:$0xff] %v2928_v1 }
  0x45   : > { %365 = vst [vmem:[#allocation4 + $0x1e0] sm:$0xff] %v2928_v1 }
  0x46   : > { %366 = vst [vmem:[#allocation4 + $0x1e8] sm:$0xff] %v2928_v1 }
  0x47   : > { %367 = vst [vmem:[#allocation4 + $0x1f0] sm:$0xff] %v2928_v1 }
  0x48   : > { %368 = vst [vmem:[#allocation4 + $0x1f8] sm:$0xff] %v2928_v1 }
  0x49 PF: > { %v2291_v2 = vld [vmem:[#allocation8 + $0xe0] sm:$0xf]  ;;  %v2558_v3 = vld [vmem:[#allocation8 + $0xec] sm:$0xf0]  ;;  %v2556_v4 = vld [vmem:[#allocation8 + $0xe4] sm:$0xf] }
  0x4a   : > { %v3024_v5 = vor.u32 %v2558_v3, %v2291_v2  ;;  %v2293_v6 = vld [vmem:[#allocation8 + $0xf0] sm:$0xf0]  ;;  %v2299_v7 = vld [vmem:[#allocation8 + $0xe8] sm:$0xf]  ;;  %v2559_v8 = vld [vmem:[#allocation8 + $0xf4] sm:$0xf0] }
  0x4b   : > { %v3026_v9 = vor.u32 %v2556_v4, %v2293_v6  ;;  %v3028_v10 = vor.u32 %v2559_v8, %v2299_v7  ;;  %v2275_v11 = vld [vmem:[#allocation8 + $0xc0] sm:$0xf]  ;;  %v2554_v12 = vld [vmem:[#allocation8 + $0xcc] sm:$0xf0]  ;;  %v2552_v13 = vld [vmem:[#allocation8 + $0xc4] sm:$0xf] }
  0x4c   : > { %570 = vmatpush.bf16.msra.mxu0 %v3024_v5  ;;  %v3031_v14 = vor.u32 %v2554_v12, %v2275_v11  ;;  %v2277_v15 = vld [vmem:[#allocation8 + $0xd0] sm:$0xf0]  ;;  %v2283_v16 = vld [vmem:[#allocation8 + $0xc8] sm:$0xf]  ;;  %v2555_v17 = vld [vmem:[#allocation8 + $0xd4] sm:$0xf0] }
  0x4d   : > { %583 = vmatpush.bf16.msra.mxu1 %v3026_v9  ;;  %596 = vmatpush.bf16.msra.mxu2 %v3028_v10  ;;  %v3035_v18 = vor.u32 %v2552_v13, %v2277_v15  ;;  %v3037_v19 = vor.u32 %v2555_v17, %v2283_v16  ;;  %v2557_v20 = vld [vmem:[#allocation8 + $0xec] sm:$0xf]  ;;  %v2301_v21 = vld [vmem:[#allocation8 + $0xf8] sm:$0xf0]  ;;  %v2259_v22 = vld [vmem:[#allocation8 + $0xa0] sm:$0xf] }
  0x4e   : > { %v3039_v23 = vor.u32 %v2557_v20, %v2301_v21  ;;  %v2550_v24 = vld [vmem:[#allocation8 + $0xac] sm:$0xf0]  ;;  %v2548_v25 = vld [vmem:[#allocation8 + $0xa4] sm:$0xf]  ;;  %v2261_v26 = vld [vmem:[#allocation8 + $0xb0] sm:$0xf0] }
  0x4f   : > { %v2267_v27 = vld [vmem:[#allocation8 + $0xa8] sm:$0xf]  ;;  %v2551_v28 = vld [vmem:[#allocation8 + $0xb4] sm:$0xf0]  ;;  %v2553_v29 = vld [vmem:[#allocation8 + $0xcc] sm:$0xf]  ;;  %v3043_v30 = vor.u32 %v2550_v24, %v2259_v22  ;;  %v3047_v34 = vor.u32 %v2548_v25, %v2261_v26 }
  0x50   : > { %571 = vmatpush.bf16.msra.mxu0 %v3031_v14  ;;  %609 = vmatpush.bf16.msra.mxu3 %v3039_v23  ;;  %v2285_v31 = vld [vmem:[#allocation8 + $0xd8] sm:$0xf0]  ;;  %v2243_v32 = vld [vmem:[#allocation8 + $0x80] sm:$0xf]  ;;  %v2546_v33 = vld [vmem:[#allocation8 + $0x8c] sm:$0xf0]  ;;  %v3049_v35 = vor.u32 %v2551_v28, %v2267_v27 }
  0x51   : > { %584 = vmatpush.bf16.msra.mxu1 %v3035_v18  ;;  %597 = vmatpush.bf16.msra.mxu2 %v3037_v19  ;;  %v3051_v36 = vor.u32 %v2553_v29, %v2285_v31  ;;  %v2544_v37 = vld [vmem:[#allocation8 + $0x84] sm:$0xf]  ;;  %v2245_v38 = vld [vmem:[#allocation8 + $0x90] sm:$0xf0]  ;;  %v2251_v39 = vld [vmem:[#allocation8 + $0x88] sm:$0xf]  ;;  %v3055_v43 = vor.u32 %v2546_v33, %v2243_v32 }
  0x52   : > { %v2547_v40 = vld [vmem:[#allocation8 + $0x94] sm:$0xf0]  ;;  %v2549_v41 = vld [vmem:[#allocation8 + $0xac] sm:$0xf]  ;;  %v2269_v42 = vld [vmem:[#allocation8 + $0xb8] sm:$0xf0]  ;;  %v3061_v47 = vor.u32 %v2544_v37, %v2245_v38 }
  0x53   : > { %v3057_v44 = vor.u32 %v2549_v41, %v2269_v42  ;;  %v2227_v45 = vld [vmem:[#allocation8 + $0x60] sm:$0xf]  ;;  %v2542_v46 = vld [vmem:[#allocation8 + $0x6c] sm:$0xf0]  ;;  %v3063_v48 = vor.u32 %v2547_v40, %v2251_v39  ;;  %v2540_v49 = vld [vmem:[#allocation8 + $0x64] sm:$0xf] }
  0x54   : > { %572 = vmatpush.bf16.msra.mxu0 %v3043_v30  ;;  %610 = vmatpush.bf16.msra.mxu3 %v3051_v36  ;;  %v2545_v50 = vld [vmem:[#allocation8 + $0x8c] sm:$0xf]  ;;  %v2253_v51 = vld [vmem:[#allocation8 + $0x98] sm:$0xf0]  ;;  %v2229_v52 = vld [vmem:[#allocation8 + $0x70] sm:$0xf0]  ;;  %v3067_v55 = vor.u32 %v2542_v46, %v2227_v45 }
  0x55   : > { %585 = vmatpush.bf16.msra.mxu1 %v3047_v34  ;;  %598 = vmatpush.bf16.msra.mxu2 %v3049_v35  ;;  %v2235_v53 = vld [vmem:[#allocation8 + $0x68] sm:$0xf]  ;;  %v2543_v54 = vld [vmem:[#allocation8 + $0x74] sm:$0xf0]  ;;  %v3069_v56 = vor.u32 %v2545_v50, %v2253_v51  ;;  %v2211_v57 = vld [vmem:[#allocation8 + $0x40] sm:$0xf]  ;;  %v3073_v59 = vor.u32 %v2540_v49, %v2229_v52 }
  0x56   : > { %v2538_v58 = vld [vmem:[#allocation8 + $0x4c] sm:$0xf0]  ;;  %v3075_v60 = vor.u32 %v2543_v54, %v2235_v53  ;;  %v2536_v61 = vld [vmem:[#allocation8 + $0x44] sm:$0xf]  ;;  %v2541_v62 = vld [vmem:[#allocation8 + $0x6c] sm:$0xf] }
  0x57   : > { %v2237_v63 = vld [vmem:[#allocation8 + $0x78] sm:$0xf0]  ;;  %v2213_v0 = vld [vmem:[#allocation8 + $0x50] sm:$0xf0]  ;;  %v2219_v1 = vld [vmem:[#allocation8 + $0x48] sm:$0xf]  ;;  %v3079_v3 = vor.u32 %v2538_v58, %v2211_v57 }
  0x58   : > { %573 = vmatpush.bf16.msra.mxu0 %v3055_v43  ;;  %611 = vmatpush.bf16.msra.mxu3 %v3057_v44  ;;  %v2539_v2 = vld [vmem:[#allocation8 + $0x54] sm:$0xf0]  ;;  %v3081_v4 = vor.u32 %v2541_v62, %v2237_v63  ;;  %v2195_v6 = vld [vmem:[#allocation8 + $0x20] sm:$0xf]  ;;  %v2534_v7 = vld [vmem:[#allocation8 + $0x2c] sm:$0xf0]  ;;  %v3085_v8 = vor.u32 %v2536_v61, %v2213_v0 }
  0x59   : > { %586 = vmatpush.bf16.msra.mxu1 %v3061_v47  ;;  %599 = vmatpush.bf16.msra.mxu2 %v3063_v48  ;;  %v3087_v11 = vor.u32 %v2539_v2, %v2219_v1  ;;  %v2532_v12 = vld [vmem:[#allocation8 + $0x24] sm:$0xf]  ;;  %v2537_v13 = vld [vmem:[#allocation8 + $0x4c] sm:$0xf]  ;;  %v2221_v15 = vld [vmem:[#allocation8 + $0x58] sm:$0xf0]  ;;  %v3091_v21 = vor.u32 %v2534_v7, %v2195_v6 }
  0x5a   : > { %v2197_v16 = vld [vmem:[#allocation8 + $0x30] sm:$0xf0]  ;;  %v2203_v17 = vld [vmem:[#allocation8 + $0x28] sm:$0xf]  ;;  %v2535_v20 = vld [vmem:[#allocation8 + $0x34] sm:$0xf0]  ;;  %v3093_v22 = vor.u32 %v2537_v13, %v2221_v15 }
  0x5b   : > { %v2179_v24 = vld [vmem:[#allocation8] sm:$0xf]  ;;  %v2530_v25 = vld [vmem:[#allocation8 + $0xc] sm:$0xf0]  ;;  %v3097_v26 = vor.u32 %v2532_v12, %v2197_v16  ;;  %v3099_v27 = vor.u32 %v2535_v20, %v2203_v17  ;;  %v2528_v28 = vld [vmem:[#allocation8 + $0x4] sm:$0xf] }
  0x5c   : > { %574 = vmatpush.bf16.msra.mxu0 %v3067_v55  ;;  %612 = vmatpush.bf16.msra.mxu3 %v3069_v56  ;;  %v2533_v29 = vld [vmem:[#allocation8 + $0x2c] sm:$0xf]  ;;  %v2205_v31 = vld [vmem:[#allocation8 + $0x38] sm:$0xf0]  ;;  %v2181_v32 = vld [vmem:[#allocation8 + $0x10] sm:$0xf0]  ;;  %v3103_v38 = vor.u32 %v2530_v25, %v2179_v24 }
  0x5d   : > { %587 = vmatpush.bf16.msra.mxu1 %v3073_v59  ;;  %600 = vmatpush.bf16.msra.mxu2 %v3075_v60  ;;  %v2187_v33 = vld [vmem:[#allocation8 + $0x8] sm:$0xf]  ;;  %v2531_v37 = vld [vmem:[#allocation8 + $0x14] sm:$0xf0]  ;;  %v3105_v39 = vor.u32 %v2533_v29, %v2205_v31  ;;  %v3109_v40 = vor.u32 %v2528_v28, %v2181_v32  ;;  %v2529_v42 = vld [vmem:[#allocation8 + $0xc] sm:$0xf] }
  0x5e   : > { %v3111_v41 = vor.u32 %v2531_v37, %v2187_v33  ;;  %v2189_v45 = vld [vmem:[#allocation8 + $0x18] sm:$0xf0]  ;;  %v401_v46 = vld [vmem:[#allocation2] sm:$0xf]  ;;  %s2560_s12 = sshll.u32 %s3571_s27, 8  ;;  %s2573_s16 = sshll.u32 %s3575_s11, 8 }
  0x5f   : > { %v3117_v49 = vor.u32 %v2529_v42, %v2189_v45  ;;  %s3185_s13 = scalar_lea.vmem [#allocation4], %s2560_s12  ;;  %s3465_s17 = scalar_lea.vmem [#allocation4], %s2573_s16 }
  0x60   : > { %575 = vmatpush.bf16.msra.mxu0 %v3079_v3  ;;  %613 = vmatpush.bf16.msra.mxu3 %v3081_v4  ;;  %v406_v50 = vld [vmem:[%s3185_s13] sm:$0xff]  ;;  %v407_v51 = vld [vmem:[%s3185_s13 + $0x8] sm:$0xff]  ;;  %v408_v62 = vld [vmem:[%s3185_s13 + $0x10] sm:$0xff]  ;;  %p2395_p12 = scmp.ne.s32.totalorder %s2971_s22, 1 }
  0x61   : > { %588 = vmatpush.bf16.msra.mxu1 %v3085_v8  ;;  %601 = vmatpush.bf16.msra.mxu2 %v3087_v11  ;;  %v409_v17 = vld [vmem:[%s3185_s13 + $0x18] sm:$0xff] }
  0x64   : > { %576 = vmatpush.bf16.msra.mxu0 %v3091_v21  ;;  %614 = vmatpush.bf16.msra.mxu3 %v3093_v22 }
  0x65   : > { %589 = vmatpush.bf16.msra.mxu1 %v3097_v26  ;;  %602 = vmatpush.bf16.msra.mxu2 %v3099_v27 }
  0x68   : > { %577 = vmatpush.bf16.msra.mxu0 %v3103_v38  ;;  %615 = vmatpush.bf16.msra.mxu3 %v3105_v39 }
  0x69   : > { %590 = vmatpush.bf16.msra.mxu1 %v3109_v40  ;;  %603 = vmatpush.bf16.msra.mxu2 %v3111_v41 }
  0x6b   : > { %578 = vmatmul.bf16.vlgmr.msra.gmra.mxu0 %v401_v46 }
  0x6c   : > { %694 = vmatpush.bf16.msrb.mxu0 %v3024_v5  ;;  %591 = vmatmul.bf16.vlgmr.msra.gmra.mxu1 %v401_v46 }
  0x6d   : > { %707 = vmatpush.bf16.msrb.mxu1 %v3026_v9  ;;  %720 = vmatpush.bf16.msrb.mxu2 %v3028_v10 }
  0x6e   : > { %604 = vmatmul.bf16.vlgmr.msra.gmra.mxu2 %v401_v46  ;;  %616 = vmatpush.bf16.msra.mxu3 %v3117_v49 }
  0x70   : > { %695 = vmatpush.bf16.msrb.mxu0 %v3031_v14 }
  0x71   : > { %708 = vmatpush.bf16.msrb.mxu1 %v3035_v18  ;;  %721 = vmatpush.bf16.msrb.mxu2 %v3037_v19 }
  0x72   : > { %733 = vmatpush.bf16.msrb.mxu3 %v3039_v23 }
  0x73   : > { %617 = vmatmul.bf16.vlgmr.msra.gmra.mxu3 %v401_v46 }
  0x74   : > { %696 = vmatpush.bf16.msrb.mxu0 %v3043_v30 }
  0x75   : > { %709 = vmatpush.bf16.msrb.mxu1 %v3047_v34  ;;  %722 = vmatpush.bf16.msrb.mxu2 %v3049_v35 }
  0x76   : > { %734 = vmatpush.bf16.msrb.mxu3 %v3051_v36 }
  0x78   : > { %697 = vmatpush.bf16.msrb.mxu0 %v3055_v43 }
  0x79   : > { %710 = vmatpush.bf16.msrb.mxu1 %v3061_v47  ;;  %723 = vmatpush.bf16.msrb.mxu2 %v3063_v48 }
  0x7a   : > { %735 = vmatpush.bf16.msrb.mxu3 %v3057_v44 }
  0x7c   : > { %698 = vmatpush.bf16.msrb.mxu0 %v3067_v55 }
  0x7d   : > { %711 = vmatpush.bf16.msrb.mxu1 %v3073_v59  ;;  %724 = vmatpush.bf16.msrb.mxu2 %v3075_v60 }
  0x7e   : > { %736 = vmatpush.bf16.msrb.mxu3 %v3069_v56 }
  0x80   : > { %699 = vmatpush.bf16.msrb.mxu0 %v3079_v3 }
  0x81   : > { %712 = vmatpush.bf16.msrb.mxu1 %v3085_v8  ;;  %725 = vmatpush.bf16.msrb.mxu2 %v3087_v11 }
  0x82   : > { %737 = vmatpush.bf16.msrb.mxu3 %v3081_v4 }
  0x84   : > { %700 = vmatpush.bf16.msrb.mxu0 %v3091_v21 }
  0x85   : > { %713 = vmatpush.bf16.msrb.mxu1 %v3097_v26  ;;  %726 = vmatpush.bf16.msrb.mxu2 %v3099_v27 }
  0x86   : > { %738 = vmatpush.bf16.msrb.mxu3 %v3093_v22 }
  0x88   : > { %701 = vmatpush.bf16.msrb.mxu0 %v3103_v38 }
  0x89   : > { %714 = vmatpush.bf16.msrb.mxu1 %v3109_v40  ;;  %727 = vmatpush.bf16.msrb.mxu2 %v3111_v41 }
  0x8a   : > { %739 = vmatpush.bf16.msrb.mxu3 %v3105_v39 }
  0x8c   : > { %818 = vmatpush.bf16.msra.mxu0 %v3024_v5 }
  0x8d   : > { %831 = vmatpush.bf16.msra.mxu1 %v3026_v9  ;;  %844 = vmatpush.bf16.msra.mxu2 %v3028_v10 }
  0x8e   : > { %740 = vmatpush.bf16.msrb.mxu3 %v3117_v49 }
  0x90   : > { %819 = vmatpush.bf16.msra.mxu0 %v3031_v14 }
  0x91   : > { %832 = vmatpush.bf16.msra.mxu1 %v3035_v18  ;;  %845 = vmatpush.bf16.msra.mxu2 %v3037_v19 }
  0x92   : > { %857 = vmatpush.bf16.msra.mxu3 %v3039_v23 }
  0x94   : > { %820 = vmatpush.bf16.msra.mxu0 %v3043_v30 }
  0x95   : > { %833 = vmatpush.bf16.msra.mxu1 %v3047_v34  ;;  %846 = vmatpush.bf16.msra.mxu2 %v3049_v35 }
  0x96   : > { %858 = vmatpush.bf16.msra.mxu3 %v3051_v36 }
  0x98   : > { %821 = vmatpush.bf16.msra.mxu0 %v3055_v43 }
  0x99   : > { %834 = vmatpush.bf16.msra.mxu1 %v3061_v47  ;;  %847 = vmatpush.bf16.msra.mxu2 %v3063_v48 }
  0x9a   : > { %859 = vmatpush.bf16.msra.mxu3 %v3057_v44 }
  0x9c   : > { %822 = vmatpush.bf16.msra.mxu0 %v3067_v55 }
  0x9d   : > { %835 = vmatpush.bf16.msra.mxu1 %v3073_v59  ;;  %848 = vmatpush.bf16.msra.mxu2 %v3075_v60 }
  0x9e   : > { %860 = vmatpush.bf16.msra.mxu3 %v3069_v56 }
  0xa0   : > { %823 = vmatpush.bf16.msra.mxu0 %v3079_v3 }
  0xa1   : > { %836 = vmatpush.bf16.msra.mxu1 %v3085_v8  ;;  %849 = vmatpush.bf16.msra.mxu2 %v3087_v11 }
  0xa2   : > { %861 = vmatpush.bf16.msra.mxu3 %v3081_v4 }
  0xa4   : > { %824 = vmatpush.bf16.msra.mxu0 %v3091_v21 }
  0xa5   : > { %837 = vmatpush.bf16.msra.mxu1 %v3097_v26  ;;  %850 = vmatpush.bf16.msra.mxu2 %v3099_v27 }
  0xa6   : > { %862 = vmatpush.bf16.msra.mxu3 %v3093_v22 }
  0xa8   : > { %825 = vmatpush.bf16.msra.mxu0 %v3103_v38 }
  0xa9   : > { %838 = vmatpush.bf16.msra.mxu1 %v3109_v40  ;;  %851 = vmatpush.bf16.msra.mxu2 %v3111_v41 }
  0xaa   : > { %863 = vmatpush.bf16.msra.mxu3 %v3105_v39 }
  0xae   : > { %864 = vmatpush.bf16.msra.mxu3 %v3117_v49 }
  0xe8   : > { %v579_v52 = vpop.f32.mrf.mxu0 }
  0xe9   : > { %v622_v53 = vadd.f32 %v579_v52, %v406_v50  ;;  %v592_v54 = vpop.f32.mrf.mxu1 }
  0xea   : > { %v623_v57 = vadd.f32 %v592_v54, %v407_v51 }
  0xeb   : > { %v2305_v58 = vmul.f32 -1.442695, %v622_v53 }
  0xec   : > { %v2306_v61 = vmul.f32 -1.442695, %v623_v57 }
  0xed   : > { %2656 = vpow2.f32 %v2305_v58 }
  0xee   : > { %2658 = vpow2.f32 %v2306_v61 }
  0xf0   : > { %v581_v1 = vpop.f32.mrf.mxu0 }
  0xf1   : > { %v605_v63 = vpop.f32.mrf.mxu2  ;;  %v594_v2 = vpop.f32.mrf.mxu1 }
  0xf2   : > { %v624_v0 = vadd.f32 %v605_v63, %v408_v62  ;;  %v402_v2 = vld [vmem:[#allocation3] sm:$0xff] }
  0xf3   : > { %v2657_v7 = vpop.eup %2656 }
  0xf4   : > { %v2307_v6 = vmul.f32 -1.442695, %v624_v0  ;;  %v2659_v13 = vpop.eup %2658  ;;  %v635_v15 = vadd.f32 1.0, %v2657_v7 }
  0xf5   : > { %v636_v16 = vadd.f32 1.0, %v2659_v13 }
  0xf6   : > { %v618_v12 = vpop.f32.mrf.mxu3  ;;  %2660 = vpow2.f32 %v2307_v6  ;;  %v649_v46 = vand.u32 2147483648, %v635_v15  ;;  %v647_v52 = vand.u32 2147483647, %v635_v15  ;;  %vm643_vm2 = vweird.f32 %v635_v15 }
  0xf7   : > { %2662 = vrcp.f32 %v635_v15  ;;  %v625_v25 = vadd.f32 %v618_v12, %v409_v17  ;;  %v664_v50 = vand.u32 2147483648, %v636_v16  ;;  %v662_v54 = vand.u32 2147483647, %v636_v16 }
  0xf8   : > { %2664 = vrcp.f32 %v636_v16  ;;  %vm658_vm3 = vweird.f32 %v636_v16  ;;  %v650_v63 = vor.u32 1.1754944e-38, %v649_v46  ;;  %vm648_vm6 = vcmp.eq.f32.partialorder %v647_v52, 8.507059e+37 }
  0xf9   : > { %v607_v20 = vpop.f32.mrf.mxu2  ;;  %v665_v1 = vor.u32 1.1754944e-38, %v664_v50  ;;  %vm663_vm7 = vcmp.eq.f32.partialorder %v662_v54, 8.507059e+37  ;;  %v691_v50 = vld [vmem:[%s3185_s13 + $0x28] sm:$0xff] }
  0xfc   : > { %v2661_v24 = vpop.eup %2660 }
  0xfd   : > { %v637_v28 = vadd.f32 1.0, %v2661_v24  ;;  %v2663_v31 = vpop.eup %2662 }
  0xfe   : > { %v620_v29 = vpop.f32.mrf.mxu3  ;;  %v2665_v32 = vpop.eup %2664  ;;  %v639_v33 = vmul.f32 %v2663_v31, %v635_v15  ;;  %vm644_vm0 = vweird.f32 %v2663_v31 }
  0xff   : > { %2666 = vrcp.f32 %v637_v28  ;;  %v654_v37 = vmul.f32 %v2665_v32, %v636_v16  ;;  %vm659_vm1 = vweird.f32 %v2665_v32  ;;  %vm645_vm4 = vmor %vm643_vm2, %vm644_vm0  ;;  %v679_v29 = vand.u32 2147483648, %v637_v28 }
 0x100   : > { %2668 = vtanh.f32 %v625_v25  ;;  %v640_v42 = vsub.f32 1.0, %v639_v33  ;;  %vm660_vm5 = vmor %vm658_vm3, %vm659_vm1  ;;  %vm673_vm9 = vweird.f32 %v637_v28  ;;  %v677_v33 = vand.u32 2147483647, %v637_v28 }
 0x101   : > { %v655_v45 = vsub.f32 1.0, %v654_v37  ;;  %v680_v37 = vor.u32 1.1754944e-38, %v679_v29 }
 0x102   : > { %v641_v51 = vmul.f32 %v2663_v31, %v640_v42  ;;  %vm678_vm11 = vcmp.eq.f32.partialorder %v677_v33, 8.507059e+37 }
 0x103   : > { %v656_v53 = vmul.f32 %v2665_v32, %v655_v45 }
 0x104   : > { %v642_v58 = vadd.f32 %v2663_v31, %v641_v51 }
 0x105   : > { %v2667_v57 = vpop.eup %2666  ;;  %v657_v0 = vadd.f32 %v2665_v32, %v656_v53 }
 0x106   : > { %v2669_v61 = vpop.eup %2668  ;;  %v669_v62 = vmul.f32 %v2667_v57, %v637_v28  ;;  %v646_v6 = vsel %vm645_vm4, %v2663_v31, %v642_v58  ;;  %vm674_vm8 = vweird.f32 %v2667_v57  ;;  %v690_v28 = vld [vmem:[%s3185_s13 + $0x20] sm:$0xff] }
 0x107   : > { %v651_v12 = vsel %vm648_vm6, %v650_v63, %v646_v6  ;;  %v661_v13 = vsel %vm660_vm5, %v2665_v32, %v657_v0  ;;  %vm675_vm10 = vmor %vm673_vm9, %vm674_vm8 }
 0x108   : > { %v670_v7 = vsub.f32 1.0, %v669_v62  ;;  %v666_v17 = vsel %vm663_vm7, %v665_v1, %v661_v13  ;;  %v685_v20 = vmul.f32 %v2669_v61, %v651_v12  ;;  %v692_v61 = vld [vmem:[%s3185_s13 + $0x30] sm:$0xff] }
 0x109   : > { %v684_v24 = vmul.f32 %v666_v17, %v402_v2 }
 0x10a   : > { %v671_v25 = vmul.f32 %v2667_v57, %v670_v7 }
 0x10b   : > { %v3191_v15 = vadd.f32 %v685_v20, %v684_v24 }
 0x10c   : > { %v672_v16 = vadd.f32 %v2667_v57, %v671_v25  ;;  %v693_v25 = vld [vmem:[%s3185_s13 + $0x38] sm:$0xff] }
 0x10d   : > { %2670 = vtanh.f32 %v3191_v15 }
 0x10e   : > { %v676_v31 = vsel %vm675_vm10, %v2667_v57, %v672_v16 }
 0x10f   : > { %v681_v32 = vsel %vm678_vm11, %v680_v37, %v676_v31 }
 0x113   : > { %v2671_v42 = vpop.eup %2670 }
 0x114   : > { %v688_v45 = vmul.f32 %v2671_v42, %v681_v32 }
 0x116   : > { %v689_v46 = vpack.c.bf16 %v688_v45, %v688_v45 }
 0x118   : > { %702 = vmatmul.bf16.vlgmr.msrb.gmra.mxu0 %v689_v46  ;;  %715 = vmatmul.bf16.vlgmr.msrb.gmra.mxu1 %v689_v46 }
 0x119   : > { %728 = vmatmul.bf16.vlgmr.msrb.gmra.mxu2 %v689_v46  ;;  %741 = vmatmul.bf16.vlgmr.msrb.gmra.mxu3 %v689_v46 }
 0x11a   : > { %942 = vmatpush.bf16.msrb.mxu0 %v3024_v5  ;;  %955 = vmatpush.bf16.msrb.mxu1 %v3026_v9 }
 0x11b   : > { %968 = vmatpush.bf16.msrb.mxu2 %v3028_v10  ;;  %981 = vmatpush.bf16.msrb.mxu3 %v3039_v23 }
 0x11e   : > { %943 = vmatpush.bf16.msrb.mxu0 %v3031_v14  ;;  %956 = vmatpush.bf16.msrb.mxu1 %v3035_v18 }
 0x11f   : > { %969 = vmatpush.bf16.msrb.mxu2 %v3037_v19  ;;  %982 = vmatpush.bf16.msrb.mxu3 %v3051_v36 }
 0x122   : > { %944 = vmatpush.bf16.msrb.mxu0 %v3043_v30  ;;  %957 = vmatpush.bf16.msrb.mxu1 %v3047_v34 }
 0x123   : > { %970 = vmatpush.bf16.msrb.mxu2 %v3049_v35  ;;  %983 = vmatpush.bf16.msrb.mxu3 %v3057_v44 }
 0x126   : > { %945 = vmatpush.bf16.msrb.mxu0 %v3055_v43  ;;  %958 = vmatpush.bf16.msrb.mxu1 %v3061_v47 }
 0x127   : > { %971 = vmatpush.bf16.msrb.mxu2 %v3063_v48  ;;  %984 = vmatpush.bf16.msrb.mxu3 %v3069_v56 }
 0x12a   : > { %946 = vmatpush.bf16.msrb.mxu0 %v3067_v55  ;;  %959 = vmatpush.bf16.msrb.mxu1 %v3073_v59 }
 0x12b   : > { %972 = vmatpush.bf16.msrb.mxu2 %v3075_v60  ;;  %985 = vmatpush.bf16.msrb.mxu3 %v3081_v4 }
 0x12e   : > { %947 = vmatpush.bf16.msrb.mxu0 %v3079_v3  ;;  %960 = vmatpush.bf16.msrb.mxu1 %v3085_v8 }
 0x12f   : > { %973 = vmatpush.bf16.msrb.mxu2 %v3087_v11  ;;  %986 = vmatpush.bf16.msrb.mxu3 %v3093_v22 }
 0x132   : > { %948 = vmatpush.bf16.msrb.mxu0 %v3091_v21  ;;  %961 = vmatpush.bf16.msrb.mxu1 %v3097_v26 }
 0x133   : > { %974 = vmatpush.bf16.msrb.mxu2 %v3099_v27  ;;  %987 = vmatpush.bf16.msrb.mxu3 %v3105_v39 }
 0x136   : > { %949 = vmatpush.bf16.msrb.mxu0 %v3103_v38  ;;  %962 = vmatpush.bf16.msrb.mxu1 %v3109_v40 }
 0x137   : > { %975 = vmatpush.bf16.msrb.mxu2 %v3111_v41  ;;  %988 = vmatpush.bf16.msrb.mxu3 %v3117_v49 }
 0x195   : > { %v703_v51 = vpop.f32.mrf.mxu0  ;;  %v716_v52 = vpop.f32.mrf.mxu1 }
 0x196   : > { %v746_v53 = vadd.f32 %v703_v51, %v690_v28  ;;  %v747_v54 = vadd.f32 %v716_v52, %v691_v50 }
 0x198   : > { %v2308_v57 = vmul.f32 -1.442695, %v746_v53  ;;  %v2309_v58 = vmul.f32 -1.442695, %v747_v54 }
 0x19a   : > { %2672 = vpow2.f32 %v2308_v57 }
 0x19b   : > { %2674 = vpow2.f32 %v2309_v58 }
 0x19c   : > { %v729_v62 = vpop.f32.mrf.mxu2  ;;  %v742_v63 = vpop.f32.mrf.mxu3 }
 0x19d   : > { %v748_v0 = vadd.f32 %v729_v62, %v692_v61  ;;  %v705_v1 = vpop.f32.mrf.mxu0  ;;  %v718_v2 = vpop.f32.mrf.mxu1  ;;  %v749_v31 = vadd.f32 %v742_v63, %v693_v25 }
 0x19f   : > { %v2310_v6 = vmul.f32 -1.442695, %v748_v0 }
 0x1a0   : > { %v2673_v7 = vpop.eup %2672 }
 0x1a1   : > { %v2675_v12 = vpop.eup %2674  ;;  %v759_v13 = vadd.f32 1.0, %v2673_v7  ;;  %2676 = vpow2.f32 %v2310_v6 }
 0x1a2   : > { %v760_v17 = vadd.f32 1.0, %v2675_v12 }
 0x1a3   : > { %2678 = vrcp.f32 %v759_v13  ;;  %v773_v28 = vand.u32 2147483648, %v759_v13  ;;  %v771_v52 = vand.u32 2147483647, %v759_v13  ;;  %vm767_vm14 = vweird.f32 %v759_v13 }
 0x1a4   : > { %2680 = vrcp.f32 %v760_v17  ;;  %v731_v20 = vpop.f32.mrf.mxu2  ;;  %v744_v24 = vpop.f32.mrf.mxu3  ;;  %v788_v50 = vand.u32 2147483648, %v760_v17  ;;  %v786_v54 = vand.u32 2147483647, %v760_v17  ;;  %vm782_vm15 = vweird.f32 %v760_v17 }
 0x1a5   : > { %v774_v62 = vor.u32 1.1754944e-38, %v773_v28  ;;  %vm772_vm2 = vcmp.eq.f32.partialorder %v771_v52, 8.507059e+37 }
 0x1a6   : > { %v789_v0 = vor.u32 1.1754944e-38, %v788_v50  ;;  %vm787_vm3 = vcmp.eq.f32.partialorder %v786_v54, 8.507059e+37 }
 0x1a7   : > { %v2677_v16 = vpop.eup %2676 }
 0x1a8   : > { %v761_v29 = vadd.f32 1.0, %v2677_v16 }
 0x1a9   : > { %v2679_v33 = vpop.eup %2678 }
 0x1aa   : > { %v2681_v37 = vpop.eup %2680  ;;  %v763_v42 = vmul.f32 %v2679_v33, %v759_v13  ;;  %2682 = vrcp.f32 %v761_v29  ;;  %vm768_vm12 = vweird.f32 %v2679_v33  ;;  %vm797_vm5 = vweird.f32 %v761_v29 }
 0x1ab   : > { %v778_v32 = vmul.f32 %v2681_v37, %v760_v17  ;;  %2684 = vtanh.f32 %v749_v31  ;;  %vm783_vm13 = vweird.f32 %v2681_v37  ;;  %vm769_vm0 = vmor %vm767_vm14, %vm768_vm12  ;;  %v803_v31 = vand.u32 2147483648, %v761_v29 }
 0x1ac   : > { %v764_v45 = vsub.f32 1.0, %v763_v42  ;;  %vm784_vm1 = vmor %vm782_vm15, %vm783_vm13 }
 0x1ad   : > { %v779_v46 = vsub.f32 1.0, %v778_v32  ;;  %v804_v32 = vor.u32 1.1754944e-38, %v803_v31 }
 0x1ae   : > { %v765_v51 = vmul.f32 %v2679_v33, %v764_v45 }
 0x1af   : > { %v780_v53 = vmul.f32 %v2681_v37, %v779_v46 }
 0x1b0   : > { %v2683_v57 = vpop.eup %2682  ;;  %v766_v58 = vadd.f32 %v2679_v33, %v765_v51 }
 0x1b1   : > { %v793_v61 = vmul.f32 %v2683_v57, %v761_v29  ;;  %v781_v63 = vadd.f32 %v2681_v37, %v780_v53  ;;  %v2685_v2 = vpop.eup %2684  ;;  %vm798_vm4 = vweird.f32 %v2683_v57 }
 0x1b2   : > { %v770_v1 = vsel %vm769_vm0, %v2679_v33, %v766_v58  ;;  %v801_v33 = vand.u32 2147483647, %v761_v29  ;;  %vm799_vm6 = vmor %vm797_vm5, %vm798_vm4  ;;  %v815_v29 = vld [vmem:[%s3185_s13 + $0x48] sm:$0xff]  ;;  %v816_v58 = vld [vmem:[%s3185_s13 + $0x50] sm:$0xff] }
 0x1b3   : > { %v794_v6 = vsub.f32 1.0, %v793_v61  ;;  %v775_v7 = vsel %vm772_vm2, %v774_v62, %v770_v1  ;;  %v785_v12 = vsel %vm784_vm1, %v2681_v37, %v781_v63 }
 0x1b4   : > { %v790_v20 = vsel %vm787_vm3, %v789_v0, %v785_v12  ;;  %v809_v24 = vmul.f32 %v2685_v2, %v775_v7  ;;  %vm802_vm7 = vcmp.eq.f32.partialorder %v801_v33, 8.507059e+37 }
 0x1b5   : > { %v808_v25 = vmul.f32 %v790_v20, %v3191_v15  ;;  %v795_v16 = vmul.f32 %v2683_v57, %v794_v6  ;;  %v814_v15 = vld [vmem:[%s3185_s13 + $0x40] sm:$0xff] }
 0x1b7   : > { %v3231_v13 = vadd.f32 %v809_v24, %v808_v25  ;;  %v796_v17 = vadd.f32 %v2683_v57, %v795_v16  ;;  %v817_v16 = vld [vmem:[%s3185_s13 + $0x58] sm:$0xff] }
 0x1b9   : > { %2686 = vtanh.f32 %v3231_v13  ;;  %v800_v42 = vsel %vm799_vm6, %v2683_v57, %v796_v17 }
 0x1ba   : > { %v805_v45 = vsel %vm802_vm7, %v804_v32, %v800_v42 }
 0x1bf   : > { %v2687_v37 = vpop.eup %2686 }
 0x1c0   : > { %v812_v46 = vmul.f32 %v2687_v37, %v805_v45 }
 0x1c2   : > { %v813_v28 = vpack.c.bf16 %v812_v46, %v812_v46 }
 0x1c4   : > { %826 = vmatmul.bf16.vlgmr.msra.gmra.mxu0 %v813_v28  ;;  %839 = vmatmul.bf16.vlgmr.msra.gmra.mxu1 %v813_v28 }
 0x1c5   : > { %852 = vmatmul.bf16.vlgmr.msra.gmra.mxu2 %v813_v28  ;;  %865 = vmatmul.bf16.vlgmr.msra.gmra.mxu3 %v813_v28 }
 0x1c6   : > { %1066 = vmatpush.bf16.msra.mxu0 %v3024_v5  ;;  %1079 = vmatpush.bf16.msra.mxu1 %v3026_v9 }
 0x1c7   : > { %1092 = vmatpush.bf16.msra.mxu2 %v3028_v10  ;;  %1105 = vmatpush.bf16.msra.mxu3 %v3039_v23 }
 0x1ca   : > { %1067 = vmatpush.bf16.msra.mxu0 %v3031_v14  ;;  %1080 = vmatpush.bf16.msra.mxu1 %v3035_v18 }
 0x1cb   : > { %1093 = vmatpush.bf16.msra.mxu2 %v3037_v19  ;;  %1106 = vmatpush.bf16.msra.mxu3 %v3051_v36 }
 0x1ce   : > { %1068 = vmatpush.bf16.msra.mxu0 %v3043_v30  ;;  %1081 = vmatpush.bf16.msra.mxu1 %v3047_v34 }
 0x1cf   : > { %1094 = vmatpush.bf16.msra.mxu2 %v3049_v35  ;;  %1107 = vmatpush.bf16.msra.mxu3 %v3057_v44 }
 0x1d2   : > { %1069 = vmatpush.bf16.msra.mxu0 %v3055_v43  ;;  %1082 = vmatpush.bf16.msra.mxu1 %v3061_v47 }
 0x1d3   : > { %1095 = vmatpush.bf16.msra.mxu2 %v3063_v48  ;;  %1108 = vmatpush.bf16.msra.mxu3 %v3069_v56 }
 0x1d6   : > { %1070 = vmatpush.bf16.msra.mxu0 %v3067_v55  ;;  %1083 = vmatpush.bf16.msra.mxu1 %v3073_v59 }
 0x1d7   : > { %1096 = vmatpush.bf16.msra.mxu2 %v3075_v60  ;;  %1109 = vmatpush.bf16.msra.mxu3 %v3081_v4 }
 0x1da   : > { %1071 = vmatpush.bf16.msra.mxu0 %v3079_v3  ;;  %1084 = vmatpush.bf16.msra.mxu1 %v3085_v8 }
 0x1db   : > { %1097 = vmatpush.bf16.msra.mxu2 %v3087_v11  ;;  %1110 = vmatpush.bf16.msra.mxu3 %v3093_v22 }
 0x1de   : > { %1072 = vmatpush.bf16.msra.mxu0 %v3091_v21  ;;  %1085 = vmatpush.bf16.msra.mxu1 %v3097_v26 }
 0x1df   : > { %1098 = vmatpush.bf16.msra.mxu2 %v3099_v27  ;;  %1111 = vmatpush.bf16.msra.mxu3 %v3105_v39 }
 0x1e2   : > { %1073 = vmatpush.bf16.msra.mxu0 %v3103_v38  ;;  %1086 = vmatpush.bf16.msra.mxu1 %v3109_v40 }
 0x1e3   : > { %1099 = vmatpush.bf16.msra.mxu2 %v3111_v41  ;;  %1112 = vmatpush.bf16.msra.mxu3 %v3117_v49 }
 0x241   : > { %v827_v50 = vpop.f32.mrf.mxu0  ;;  %v840_v51 = vpop.f32.mrf.mxu1 }
 0x242   : > { %v870_v52 = vadd.f32 %v827_v50, %v814_v15  ;;  %v871_v53 = vadd.f32 %v840_v51, %v815_v29 }
 0x244   : > { %v2311_v54 = vmul.f32 -1.442695, %v870_v52  ;;  %v2312_v57 = vmul.f32 -1.442695, %v871_v53 }
 0x246   : > { %2688 = vpow2.f32 %v2311_v54 }
 0x247   : > { %2690 = vpow2.f32 %v2312_v57 }
 0x248   : > { %v853_v61 = vpop.f32.mrf.mxu2  ;;  %v866_v62 = vpop.f32.mrf.mxu3 }
 0x249   : > { %v872_v63 = vadd.f32 %v853_v61, %v816_v58  ;;  %v829_v0 = vpop.f32.mrf.mxu0  ;;  %v842_v1 = vpop.f32.mrf.mxu1  ;;  %v873_v42 = vadd.f32 %v866_v62, %v817_v16 }
 0x24b   : > { %v2313_v2 = vmul.f32 -1.442695, %v872_v63 }
 0x24c   : > { %v2689_v6 = vpop.eup %2688 }
 0x24d   : > { %v2691_v7 = vpop.eup %2690  ;;  %v883_v12 = vadd.f32 1.0, %v2689_v6  ;;  %2692 = vpow2.f32 %v2313_v2 }
 0x24e   : > { %v884_v20 = vadd.f32 1.0, %v2691_v7 }
 0x24f   : > { %2694 = vrcp.f32 %v883_v12  ;;  %v897_v15 = vand.u32 2147483648, %v883_v12  ;;  %v895_v51 = vand.u32 2147483647, %v883_v12  ;;  %vm891_vm10 = vweird.f32 %v883_v12 }
 0x250   : > { %2696 = vrcp.f32 %v884_v20  ;;  %v855_v24 = vpop.f32.mrf.mxu2  ;;  %v868_v25 = vpop.f32.mrf.mxu3  ;;  %v912_v29 = vand.u32 2147483648, %v884_v20  ;;  %v910_v53 = vand.u32 2147483647, %v884_v20  ;;  %vm906_vm11 = vweird.f32 %v884_v20 }
 0x251   : > { %v898_v61 = vor.u32 1.1754944e-38, %v897_v15  ;;  %vm896_vm14 = vcmp.eq.f32.partialorder %v895_v51, 8.507059e+37 }
 0x252   : > { %v913_v63 = vor.u32 1.1754944e-38, %v912_v29  ;;  %vm911_vm15 = vcmp.eq.f32.partialorder %v910_v53, 8.507059e+37 }
 0x253   : > { %v2693_v17 = vpop.eup %2692 }
 0x254   : > { %v885_v31 = vadd.f32 1.0, %v2693_v17 }
 0x255   : > { %v2695_v33 = vpop.eup %2694 }
 0x256   : > { %v2697_v32 = vpop.eup %2696  ;;  %v887_v37 = vmul.f32 %v2695_v33, %v883_v12  ;;  %2698 = vrcp.f32 %v885_v31  ;;  %vm892_vm8 = vweird.f32 %v2695_v33  ;;  %vm921_vm1 = vweird.f32 %v885_v31 }
 0x257   : > { %v902_v45 = vmul.f32 %v2697_v32, %v884_v20  ;;  %2700 = vtanh.f32 %v873_v42  ;;  %vm907_vm9 = vweird.f32 %v2697_v32  ;;  %vm893_vm12 = vmor %vm891_vm10, %vm892_vm8  ;;  %v927_v42 = vand.u32 2147483648, %v885_v31 }
 0x258   : > { %v888_v46 = vsub.f32 1.0, %v887_v37  ;;  %vm908_vm13 = vmor %vm906_vm11, %vm907_vm9 }
 0x259   : > { %v903_v28 = vsub.f32 1.0, %v902_v45  ;;  %v928_v45 = vor.u32 1.1754944e-38, %v927_v42 }
 0x25a   : > { %v889_v50 = vmul.f32 %v2695_v33, %v888_v46 }
 0x25b   : > { %v904_v52 = vmul.f32 %v2697_v32, %v903_v28 }
 0x25c   : > { %v2699_v54 = vpop.eup %2698  ;;  %v890_v57 = vadd.f32 %v2695_v33, %v889_v50 }
 0x25d   : > { %v917_v58 = vmul.f32 %v2699_v54, %v885_v31  ;;  %v905_v62 = vadd.f32 %v2697_v32, %v904_v52  ;;  %v2701_v1 = vpop.eup %2700  ;;  %vm922_vm0 = vweird.f32 %v2699_v54 }
 0x25e   : > { %v894_v0 = vsel %vm893_vm12, %v2695_v33, %v890_v57  ;;  %v925_v33 = vand.u32 2147483647, %v885_v31  ;;  %vm923_vm2 = vmor %vm921_vm1, %vm922_vm0  ;;  %v939_v31 = vld [vmem:[%s3185_s13 + $0x68] sm:$0xff]  ;;  %v940_v57 = vld [vmem:[%s3185_s13 + $0x70] sm:$0xff] }
 0x25f   : > { %v918_v2 = vsub.f32 1.0, %v917_v58  ;;  %v899_v6 = vsel %vm896_vm14, %v898_v61, %v894_v0  ;;  %v909_v7 = vsel %vm908_vm13, %v2697_v32, %v905_v62 }
 0x260   : > { %v914_v24 = vsel %vm911_vm15, %v913_v63, %v909_v7  ;;  %v933_v25 = vmul.f32 %v2701_v1, %v899_v6  ;;  %vm926_vm3 = vcmp.eq.f32.partialorder %v925_v33, 8.507059e+37 }
 0x261   : > { %v932_v16 = vmul.f32 %v914_v24, %v3231_v13  ;;  %v919_v17 = vmul.f32 %v2699_v54, %v918_v2  ;;  %v938_v13 = vld [vmem:[%s3185_s13 + $0x60] sm:$0xff] }
 0x263   : > { %v3271_v12 = vadd.f32 %v933_v25, %v932_v16  ;;  %v920_v20 = vadd.f32 %v2699_v54, %v919_v17  ;;  %v941_v17 = vld [vmem:[%s3185_s13 + $0x78] sm:$0xff] }
 0x265   : > { %2702 = vtanh.f32 %v3271_v12  ;;  %v924_v37 = vsel %vm923_vm2, %v2699_v54, %v920_v20 }
 0x266   : > { %v929_v46 = vsel %vm926_vm3, %v928_v45, %v924_v37 }
 0x26b   : > { %v2703_v32 = vpop.eup %2702 }
 0x26c   : > { %v936_v28 = vmul.f32 %v2703_v32, %v929_v46 }
 0x26e   : > { %v937_v15 = vpack.c.bf16 %v936_v28, %v936_v28 }
 0x270   : > { %950 = vmatmul.bf16.vlgmr.msrb.gmra.mxu0 %v937_v15  ;;  %963 = vmatmul.bf16.vlgmr.msrb.gmra.mxu1 %v937_v15 }
 0x271   : > { %976 = vmatmul.bf16.vlgmr.msrb.gmra.mxu2 %v937_v15  ;;  %989 = vmatmul.bf16.vlgmr.msrb.gmra.mxu3 %v937_v15 }
 0x272   : > { %1190 = vmatpush.bf16.msrb.mxu0 %v3024_v5  ;;  %1203 = vmatpush.bf16.msrb.mxu1 %v3026_v9 }
 0x273   : > { %1216 = vmatpush.bf16.msrb.mxu2 %v3028_v10  ;;  %1229 = vmatpush.bf16.msrb.mxu3 %v3039_v23 }
 0x276   : > { %1191 = vmatpush.bf16.msrb.mxu0 %v3031_v14  ;;  %1204 = vmatpush.bf16.msrb.mxu1 %v3035_v18 }
 0x277   : > { %1217 = vmatpush.bf16.msrb.mxu2 %v3037_v19  ;;  %1230 = vmatpush.bf16.msrb.mxu3 %v3051_v36 }
 0x27a   : > { %1192 = vmatpush.bf16.msrb.mxu0 %v3043_v30  ;;  %1205 = vmatpush.bf16.msrb.mxu1 %v3047_v34 }
 0x27b   : > { %1218 = vmatpush.bf16.msrb.mxu2 %v3049_v35  ;;  %1231 = vmatpush.bf16.msrb.mxu3 %v3057_v44 }
 0x27e   : > { %1193 = vmatpush.bf16.msrb.mxu0 %v3055_v43  ;;  %1206 = vmatpush.bf16.msrb.mxu1 %v3061_v47 }
 0x27f   : > { %1219 = vmatpush.bf16.msrb.mxu2 %v3063_v48  ;;  %1232 = vmatpush.bf16.msrb.mxu3 %v3069_v56 }
 0x282   : > { %1194 = vmatpush.bf16.msrb.mxu0 %v3067_v55  ;;  %1207 = vmatpush.bf16.msrb.mxu1 %v3073_v59 }
 0x283   : > { %1220 = vmatpush.bf16.msrb.mxu2 %v3075_v60  ;;  %1233 = vmatpush.bf16.msrb.mxu3 %v3081_v4 }
 0x286   : > { %1195 = vmatpush.bf16.msrb.mxu0 %v3079_v3  ;;  %1208 = vmatpush.bf16.msrb.mxu1 %v3085_v8 }
 0x287   : > { %1221 = vmatpush.bf16.msrb.mxu2 %v3087_v11  ;;  %1234 = vmatpush.bf16.msrb.mxu3 %v3093_v22 }
 0x28a   : > { %1196 = vmatpush.bf16.msrb.mxu0 %v3091_v21  ;;  %1209 = vmatpush.bf16.msrb.mxu1 %v3097_v26 }
 0x28b   : > { %1222 = vmatpush.bf16.msrb.mxu2 %v3099_v27  ;;  %1235 = vmatpush.bf16.msrb.mxu3 %v3105_v39 }
 0x28e   : > { %1197 = vmatpush.bf16.msrb.mxu0 %v3103_v38  ;;  %1210 = vmatpush.bf16.msrb.mxu1 %v3109_v40 }
 0x28f   : > { %1223 = vmatpush.bf16.msrb.mxu2 %v3111_v41  ;;  %1236 = vmatpush.bf16.msrb.mxu3 %v3117_v49 }
 0x2ed   : > { %v951_v29 = vpop.f32.mrf.mxu0  ;;  %v964_v50 = vpop.f32.mrf.mxu1 }
 0x2ee   : > { %v994_v51 = vadd.f32 %v951_v29, %v938_v13  ;;  %v995_v52 = vadd.f32 %v964_v50, %v939_v31 }
 0x2f0   : > { %v2314_v53 = vmul.f32 -1.442695, %v994_v51  ;;  %v2315_v54 = vmul.f32 -1.442695, %v995_v52 }
 0x2f2   : > { %2704 = vpow2.f32 %v2314_v53 }
 0x2f3   : > { %2706 = vpow2.f32 %v2315_v54 }
 0x2f4   : > { %v977_v58 = vpop.f32.mrf.mxu2  ;;  %v990_v61 = vpop.f32.mrf.mxu3 }
 0x2f5   : > { %v996_v62 = vadd.f32 %v977_v58, %v940_v57  ;;  %v953_v63 = vpop.f32.mrf.mxu0  ;;  %v966_v0 = vpop.f32.mrf.mxu1  ;;  %v997_v37 = vadd.f32 %v990_v61, %v941_v17 }
 0x2f7   : > { %v2316_v1 = vmul.f32 -1.442695, %v996_v62 }
 0x2f8   : > { %v2705_v2 = vpop.eup %2704 }
 0x2f9   : > { %v2707_v6 = vpop.eup %2706  ;;  %v1007_v7 = vadd.f32 1.0, %v2705_v2  ;;  %2708 = vpow2.f32 %v2316_v1 }
 0x2fa   : > { %v1008_v24 = vadd.f32 1.0, %v2707_v6 }
 0x2fb   : > { %2710 = vrcp.f32 %v1007_v7  ;;  %v1021_v13 = vand.u32 2147483648, %v1007_v7  ;;  %v1019_v50 = vand.u32 2147483647, %v1007_v7  ;;  %vm1015_vm6 = vweird.f32 %v1007_v7 }
 0x2fc   : > { %2712 = vrcp.f32 %v1008_v24  ;;  %v979_v25 = vpop.f32.mrf.mxu2  ;;  %v992_v16 = vpop.f32.mrf.mxu3  ;;  %v1036_v31 = vand.u32 2147483648, %v1008_v24  ;;  %v1034_v52 = vand.u32 2147483647, %v1008_v24  ;;  %vm1030_vm7 = vweird.f32 %v1008_v24 }
 0x2fd   : > { %v1022_v58 = vor.u32 1.1754944e-38, %v1021_v13  ;;  %vm1020_vm10 = vcmp.eq.f32.partialorder %v1019_v50, 8.507059e+37 }
 0x2fe   : > { %v1037_v62 = vor.u32 1.1754944e-38, %v1036_v31  ;;  %vm1035_vm11 = vcmp.eq.f32.partialorder %v1034_v52, 8.507059e+37 }
 0x2ff   : > { %v2709_v20 = vpop.eup %2708 }
 0x300   : > { %v1009_v42 = vadd.f32 1.0, %v2709_v20 }
 0x301   : > { %v2711_v33 = vpop.eup %2710 }
 0x302   : > { %v2713_v45 = vpop.eup %2712  ;;  %v1011_v32 = vmul.f32 %v2711_v33, %v1007_v7  ;;  %2714 = vrcp.f32 %v1009_v42  ;;  %vm1016_vm4 = vweird.f32 %v2711_v33  ;;  %vm1045_vm13 = vweird.f32 %v1009_v42 }
 0x303   : > { %v1026_v46 = vmul.f32 %v2713_v45, %v1008_v24  ;;  %2716 = vtanh.f32 %v997_v37  ;;  %vm1031_vm5 = vweird.f32 %v2713_v45  ;;  %vm1017_vm8 = vmor %vm1015_vm6, %vm1016_vm4  ;;  %v1051_v37 = vand.u32 2147483648, %v1009_v42 }
 0x304   : > { %v1012_v28 = vsub.f32 1.0, %v1011_v32  ;;  %vm1032_vm9 = vmor %vm1030_vm7, %vm1031_vm5 }
 0x305   : > { %v1027_v15 = vsub.f32 1.0, %v1026_v46  ;;  %v1052_v46 = vor.u32 1.1754944e-38, %v1051_v37 }
 0x306   : > { %v1013_v29 = vmul.f32 %v2711_v33, %v1012_v28 }
 0x307   : > { %v1028_v51 = vmul.f32 %v2713_v45, %v1027_v15 }
 0x308   : > { %v2715_v53 = vpop.eup %2714  ;;  %v1014_v54 = vadd.f32 %v2711_v33, %v1013_v29 }
 0x309   : > { %v1041_v57 = vmul.f32 %v2715_v53, %v1009_v42  ;;  %v1029_v61 = vadd.f32 %v2713_v45, %v1028_v51  ;;  %v2717_v0 = vpop.eup %2716  ;;  %vm1046_vm12 = vweird.f32 %v2715_v53 }
 0x30a   : > { %v1018_v63 = vsel %vm1017_vm8, %v2711_v33, %v1014_v54  ;;  %v1049_v33 = vand.u32 2147483647, %v1009_v42  ;;  %vm1047_vm14 = vmor %vm1045_vm13, %vm1046_vm12  ;;  %v1063_v42 = vld [vmem:[%s3185_s13 + $0x88] sm:$0xff]  ;;  %v1064_v54 = vld [vmem:[%s3185_s13 + $0x90] sm:$0xff] }
 0x30b   : > { %v1042_v1 = vsub.f32 1.0, %v1041_v57  ;;  %v1023_v2 = vsel %vm1020_vm10, %v1022_v58, %v1018_v63  ;;  %v1033_v6 = vsel %vm1032_vm9, %v2713_v45, %v1029_v61 }
 0x30c   : > { %v1038_v25 = vsel %vm1035_vm11, %v1037_v62, %v1033_v6  ;;  %v1057_v16 = vmul.f32 %v2717_v0, %v1023_v2  ;;  %vm1050_vm15 = vcmp.eq.f32.partialorder %v1049_v33, 8.507059e+37 }
 0x30d   : > { %v1056_v17 = vmul.f32 %v1038_v25, %v3271_v12  ;;  %v1043_v20 = vmul.f32 %v2715_v53, %v1042_v1  ;;  %v1062_v12 = vld [vmem:[%s3185_s13 + $0x80] sm:$0xff] }
 0x30f   : > { %v3311_v7 = vadd.f32 %v1057_v16, %v1056_v17  ;;  %v1044_v24 = vadd.f32 %v2715_v53, %v1043_v20  ;;  %v1065_v20 = vld [vmem:[%s3185_s13 + $0x98] sm:$0xff] }
 0x311   : > { %2718 = vtanh.f32 %v3311_v7  ;;  %v1048_v32 = vsel %vm1047_vm14, %v2715_v53, %v1044_v24 }
 0x312   : > { %v1053_v28 = vsel %vm1050_vm15, %v1052_v46, %v1048_v32 }
 0x317   : > { %v2719_v45 = vpop.eup %2718 }
 0x318   : > { %v1060_v15 = vmul.f32 %v2719_v45, %v1053_v28 }
 0x31a   : > { %v1061_v13 = vpack.c.bf16 %v1060_v15, %v1060_v15 }
 0x31c   : > { %1074 = vmatmul.bf16.vlgmr.msra.gmra.mxu0 %v1061_v13  ;;  %1087 = vmatmul.bf16.vlgmr.msra.gmra.mxu1 %v1061_v13 }
 0x31d   : > { %1100 = vmatmul.bf16.vlgmr.msra.gmra.mxu2 %v1061_v13  ;;  %1113 = vmatmul.bf16.vlgmr.msra.gmra.mxu3 %v1061_v13 }
 0x31e   : > { %1314 = vmatpush.bf16.msra.mxu0 %v3024_v5  ;;  %1327 = vmatpush.bf16.msra.mxu1 %v3026_v9 }
 0x31f   : > { %1340 = vmatpush.bf16.msra.mxu2 %v3028_v10  ;;  %1353 = vmatpush.bf16.msra.mxu3 %v3039_v23 }
 0x322   : > { %1315 = vmatpush.bf16.msra.mxu0 %v3031_v14  ;;  %1328 = vmatpush.bf16.msra.mxu1 %v3035_v18 }
 0x323   : > { %1341 = vmatpush.bf16.msra.mxu2 %v3037_v19  ;;  %1354 = vmatpush.bf16.msra.mxu3 %v3051_v36 }
 0x326   : > { %1316 = vmatpush.bf16.msra.mxu0 %v3043_v30  ;;  %1329 = vmatpush.bf16.msra.mxu1 %v3047_v34 }
 0x327   : > { %1342 = vmatpush.bf16.msra.mxu2 %v3049_v35  ;;  %1355 = vmatpush.bf16.msra.mxu3 %v3057_v44 }
 0x32a   : > { %1317 = vmatpush.bf16.msra.mxu0 %v3055_v43  ;;  %1330 = vmatpush.bf16.msra.mxu1 %v3061_v47 }
 0x32b   : > { %1343 = vmatpush.bf16.msra.mxu2 %v3063_v48  ;;  %1356 = vmatpush.bf16.msra.mxu3 %v3069_v56 }
 0x32e   : > { %1318 = vmatpush.bf16.msra.mxu0 %v3067_v55  ;;  %1331 = vmatpush.bf16.msra.mxu1 %v3073_v59 }
 0x32f   : > { %1344 = vmatpush.bf16.msra.mxu2 %v3075_v60  ;;  %1357 = vmatpush.bf16.msra.mxu3 %v3081_v4 }
 0x332   : > { %1319 = vmatpush.bf16.msra.mxu0 %v3079_v3  ;;  %1332 = vmatpush.bf16.msra.mxu1 %v3085_v8 }
 0x333   : > { %1345 = vmatpush.bf16.msra.mxu2 %v3087_v11  ;;  %1358 = vmatpush.bf16.msra.mxu3 %v3093_v22 }
 0x336   : > { %1320 = vmatpush.bf16.msra.mxu0 %v3091_v21  ;;  %1333 = vmatpush.bf16.msra.mxu1 %v3097_v26 }
 0x337   : > { %1346 = vmatpush.bf16.msra.mxu2 %v3099_v27  ;;  %1359 = vmatpush.bf16.msra.mxu3 %v3105_v39 }
 0x33a   : > { %1321 = vmatpush.bf16.msra.mxu0 %v3103_v38  ;;  %1334 = vmatpush.bf16.msra.mxu1 %v3109_v40 }
 0x33b   : > { %1347 = vmatpush.bf16.msra.mxu2 %v3111_v41  ;;  %1360 = vmatpush.bf16.msra.mxu3 %v3117_v49 }
 0x399   : > { %v1075_v31 = vpop.f32.mrf.mxu0  ;;  %v1088_v29 = vpop.f32.mrf.mxu1 }
 0x39a   : > { %v1118_v50 = vadd.f32 %v1075_v31, %v1062_v12  ;;  %v1119_v51 = vadd.f32 %v1088_v29, %v1063_v42 }
 0x39c   : > { %v2317_v52 = vmul.f32 -1.442695, %v1118_v50  ;;  %v2318_v53 = vmul.f32 -1.442695, %v1119_v51 }
 0x39e   : > { %2720 = vpow2.f32 %v2317_v52 }
 0x39f   : > { %2722 = vpow2.f32 %v2318_v53 }
 0x3a0   : > { %v1101_v57 = vpop.f32.mrf.mxu2  ;;  %v1114_v58 = vpop.f32.mrf.mxu3 }
 0x3a1   : > { %v1120_v61 = vadd.f32 %v1101_v57, %v1064_v54  ;;  %v1077_v62 = vpop.f32.mrf.mxu0  ;;  %v1090_v63 = vpop.f32.mrf.mxu1  ;;  %v1121_v32 = vadd.f32 %v1114_v58, %v1065_v20 }
 0x3a3   : > { %v2319_v0 = vmul.f32 -1.442695, %v1120_v61 }
 0x3a4   : > { %v2721_v1 = vpop.eup %2720 }
 0x3a5   : > { %v2723_v2 = vpop.eup %2722  ;;  %v1131_v6 = vadd.f32 1.0, %v2721_v1  ;;  %2724 = vpow2.f32 %v2319_v0 }
 0x3a6   : > { %v1132_v25 = vadd.f32 1.0, %v2723_v2 }
 0x3a7   : > { %2726 = vrcp.f32 %v1131_v6  ;;  %v1145_v12 = vand.u32 2147483648, %v1131_v6  ;;  %v1143_v29 = vand.u32 2147483647, %v1131_v6  ;;  %vm1139_vm2 = vweird.f32 %v1131_v6 }
 0x3a8   : > { %2728 = vrcp.f32 %v1132_v25  ;;  %v1103_v16 = vpop.f32.mrf.mxu2  ;;  %v1116_v17 = vpop.f32.mrf.mxu3  ;;  %v1160_v42 = vand.u32 2147483648, %v1132_v25  ;;  %v1158_v51 = vand.u32 2147483647, %v1132_v25  ;;  %vm1154_vm3 = vweird.f32 %v1132_v25 }
 0x3a9   : > { %v1146_v57 = vor.u32 1.1754944e-38, %v1145_v12  ;;  %vm1144_vm6 = vcmp.eq.f32.partialorder %v1143_v29, 8.507059e+37 }
 0x3aa   : > { %v1161_v61 = vor.u32 1.1754944e-38, %v1160_v42  ;;  %vm1159_vm7 = vcmp.eq.f32.partialorder %v1158_v51, 8.507059e+37 }
 0x3ab   : > { %v2725_v24 = vpop.eup %2724 }
 0x3ac   : > { %v1133_v37 = vadd.f32 1.0, %v2725_v24 }
 0x3ad   : > { %v2727_v33 = vpop.eup %2726 }
 0x3ae   : > { %v2729_v46 = vpop.eup %2728  ;;  %v1135_v45 = vmul.f32 %v2727_v33, %v1131_v6  ;;  %2730 = vrcp.f32 %v1133_v37  ;;  %vm1140_vm0 = vweird.f32 %v2727_v33  ;;  %vm1169_vm9 = vweird.f32 %v1133_v37 }
 0x3af   : > { %v1150_v28 = vmul.f32 %v2729_v46, %v1132_v25  ;;  %2732 = vtanh.f32 %v1121_v32  ;;  %vm1155_vm1 = vweird.f32 %v2729_v46  ;;  %vm1141_vm4 = vmor %vm1139_vm2, %vm1140_vm0  ;;  %v1175_v32 = vand.u32 2147483648, %v1133_v37 }
 0x3b0   : > { %v1136_v15 = vsub.f32 1.0, %v1135_v45  ;;  %vm1156_vm5 = vmor %vm1154_vm3, %vm1155_vm1 }
 0x3b1   : > { %v1151_v13 = vsub.f32 1.0, %v1150_v28  ;;  %v1176_v28 = vor.u32 1.1754944e-38, %v1175_v32 }
 0x3b2   : > { %v1137_v31 = vmul.f32 %v2727_v33, %v1136_v15 }
 0x3b3   : > { %v1152_v50 = vmul.f32 %v2729_v46, %v1151_v13 }
 0x3b4   : > { %v2731_v52 = vpop.eup %2730  ;;  %v1138_v53 = vadd.f32 %v2727_v33, %v1137_v31 }
 0x3b5   : > { %v1165_v54 = vmul.f32 %v2731_v52, %v1133_v37  ;;  %v1153_v58 = vadd.f32 %v2729_v46, %v1152_v50  ;;  %v2733_v63 = vpop.eup %2732  ;;  %vm1170_vm8 = vweird.f32 %v2731_v52 }
 0x3b6   : > { %v1142_v62 = vsel %vm1141_vm4, %v2727_v33, %v1138_v53  ;;  %v1173_v33 = vand.u32 2147483647, %v1133_v37  ;;  %vm1171_vm10 = vmor %vm1169_vm9, %vm1170_vm8 }
 0x3b7   : > { %v1166_v0 = vsub.f32 1.0, %v1165_v54  ;;  %v1147_v1 = vsel %vm1144_vm6, %v1146_v57, %v1142_v62  ;;  %v1157_v2 = vsel %vm1156_vm5, %v2729_v46, %v1153_v58 }
 0x3b8   : > { %v1162_v16 = vsel %vm1159_vm7, %v1161_v61, %v1157_v2  ;;  %v1181_v17 = vmul.f32 %v2733_v63, %v1147_v1  ;;  %vm1174_vm11 = vcmp.eq.f32.partialorder %v1173_v33, 8.507059e+37 }
 0x3b9   : > { %v1180_v20 = vmul.f32 %v1162_v16, %v3311_v7  ;;  %v1167_v24 = vmul.f32 %v2731_v52, %v1166_v0 }
 0x3bb   : > { %v3351_v6 = vadd.f32 %v1181_v17, %v1180_v20  ;;  %v1168_v25 = vadd.f32 %v2731_v52, %v1167_v24 }
 0x3bd   : > { %2734 = vtanh.f32 %v3351_v6  ;;  %v1172_v45 = vsel %vm1171_vm10, %v2731_v52, %v1168_v25 }
 0x3be   : > { %v1177_v15 = vsel %vm1174_vm11, %v1176_v28, %v1172_v45 }
 0x3c3   : > { %v2735_v46 = vpop.eup %2734 }
 0x3c4   : > { %v1184_v13 = vmul.f32 %v2735_v46, %v1177_v15 }
 0x3c6   : > { %v1185_v12 = vpack.c.bf16 %v1184_v13, %v1184_v13  ;;  %v1310_v13 = vld [vmem:[%s3185_s13 + $0xc0] sm:$0xff] }
 0x3c8   : > { %1198 = vmatmul.bf16.vlgmr.msrb.gmra.mxu0 %v1185_v12  ;;  %1211 = vmatmul.bf16.vlgmr.msrb.gmra.mxu1 %v1185_v12 }
 0x3c9   : > { %1224 = vmatmul.bf16.vlgmr.msrb.gmra.mxu2 %v1185_v12  ;;  %1237 = vmatmul.bf16.vlgmr.msrb.gmra.mxu3 %v1185_v12  ;;  %v1311_v12 = vld [vmem:[%s3185_s13 + $0xc8] sm:$0xff] }
 0x3ca   : > { %1438 = vmatpush.bf16.msrb.mxu0 %v3024_v5  ;;  %1451 = vmatpush.bf16.msrb.mxu1 %v3026_v9  ;;  %v1186_v5 = vld [vmem:[%s3185_s13 + $0xa0] sm:$0xff]  ;;  %v1187_v9 = vld [vmem:[%s3185_s13 + $0xa8] sm:$0xff] }
 0x3cb   : > { %1464 = vmatpush.bf16.msrb.mxu2 %v3028_v10  ;;  %1477 = vmatpush.bf16.msrb.mxu3 %v3039_v23 }
 0x3ce   : > { %1439 = vmatpush.bf16.msrb.mxu0 %v3031_v14  ;;  %1452 = vmatpush.bf16.msrb.mxu1 %v3035_v18 }
 0x3cf   : > { %1465 = vmatpush.bf16.msrb.mxu2 %v3037_v19  ;;  %1478 = vmatpush.bf16.msrb.mxu3 %v3051_v36 }
 0x3d2   : > { %1440 = vmatpush.bf16.msrb.mxu0 %v3043_v30  ;;  %1453 = vmatpush.bf16.msrb.mxu1 %v3047_v34  ;;  %v1188_v34 = vld [vmem:[%s3185_s13 + $0xb0] sm:$0xff] }
 0x3d3   : > { %1466 = vmatpush.bf16.msrb.mxu2 %v3049_v35  ;;  %1479 = vmatpush.bf16.msrb.mxu3 %v3057_v44 }
 0x3d6   : > { %1441 = vmatpush.bf16.msrb.mxu0 %v3055_v43  ;;  %1454 = vmatpush.bf16.msrb.mxu1 %v3061_v47 }
 0x3d7   : > { %1467 = vmatpush.bf16.msrb.mxu2 %v3063_v48  ;;  %1480 = vmatpush.bf16.msrb.mxu3 %v3069_v56 }
 0x3da   : > { %1442 = vmatpush.bf16.msrb.mxu0 %v3067_v55  ;;  %1455 = vmatpush.bf16.msrb.mxu1 %v3073_v59 }
 0x3db   : > { %1468 = vmatpush.bf16.msrb.mxu2 %v3075_v60  ;;  %1481 = vmatpush.bf16.msrb.mxu3 %v3081_v4 }
 0x3de   : > { %1443 = vmatpush.bf16.msrb.mxu0 %v3079_v3  ;;  %1456 = vmatpush.bf16.msrb.mxu1 %v3085_v8  ;;  %v1189_v8 = vld [vmem:[%s3185_s13 + $0xb8] sm:$0xff] }
 0x3df   : > { %1469 = vmatpush.bf16.msrb.mxu2 %v3087_v11  ;;  %1482 = vmatpush.bf16.msrb.mxu3 %v3093_v22 }
 0x3e2   : > { %1444 = vmatpush.bf16.msrb.mxu0 %v3091_v21  ;;  %1457 = vmatpush.bf16.msrb.mxu1 %v3097_v26 }
 0x3e3   : > { %1470 = vmatpush.bf16.msrb.mxu2 %v3099_v27  ;;  %1483 = vmatpush.bf16.msrb.mxu3 %v3105_v39 }
 0x3e6   : > { %1445 = vmatpush.bf16.msrb.mxu0 %v3103_v38  ;;  %1458 = vmatpush.bf16.msrb.mxu1 %v3109_v40 }
 0x3e7   : > { %1471 = vmatpush.bf16.msrb.mxu2 %v3111_v41  ;;  %1484 = vmatpush.bf16.msrb.mxu3 %v3117_v49 }
 0x445   : > { %v1199_v10 = vpop.f32.mrf.mxu0  ;;  %v1212_v14 = vpop.f32.mrf.mxu1 }
 0x446   : > { %v1242_v18 = vadd.f32 %v1199_v10, %v1186_v5  ;;  %v1243_v19 = vadd.f32 %v1212_v14, %v1187_v9 }
 0x448   : > { %v2320_v23 = vmul.f32 -1.442695, %v1242_v18  ;;  %v2321_v30 = vmul.f32 -1.442695, %v1243_v19 }
 0x44a   : > { %2736 = vpow2.f32 %v2320_v23  ;;  %v1312_v23 = vld [vmem:[%s3185_s13 + $0xd0] sm:$0xff] }
 0x44b   : > { %2738 = vpow2.f32 %v2321_v30 }
 0x44c   : > { %v1225_v35 = vpop.f32.mrf.mxu2  ;;  %v1238_v36 = vpop.f32.mrf.mxu3 }
 0x44d   : > { %v1244_v43 = vadd.f32 %v1225_v35, %v1188_v34  ;;  %v1201_v44 = vpop.f32.mrf.mxu0  ;;  %v1214_v47 = vpop.f32.mrf.mxu1  ;;  %v1245_v26 = vadd.f32 %v1238_v36, %v1189_v8  ;;  %v1313_v8 = vld [vmem:[%s3185_s13 + $0xd8] sm:$0xff] }
 0x44f   : > { %v2322_v48 = vmul.f32 -1.442695, %v1244_v43 }
 0x450   : > { %v2737_v55 = vpop.eup %2736 }
 0x451   : > { %v2739_v56 = vpop.eup %2738  ;;  %v1255_v59 = vadd.f32 1.0, %v2737_v55  ;;  %2740 = vpow2.f32 %v2322_v48 }
 0x452   : > { %v1256_v60 = vadd.f32 1.0, %v2739_v56 }
 0x453   : > { %2742 = vrcp.f32 %v1255_v59  ;;  %v1269_v49 = vand.u32 2147483648, %v1255_v59  ;;  %v1267_v42 = vand.u32 2147483647, %v1255_v59  ;;  %vm1263_vm14 = vweird.f32 %v1255_v59 }
 0x454   : > { %2744 = vrcp.f32 %v1256_v60  ;;  %v1227_v3 = vpop.f32.mrf.mxu2  ;;  %v1240_v4 = vpop.f32.mrf.mxu3  ;;  %v1284_v7 = vand.u32 2147483648, %v1256_v60  ;;  %v1282_v29 = vand.u32 2147483647, %v1256_v60  ;;  %vm1278_vm15 = vweird.f32 %v1256_v60 }
 0x455   : > { %v1270_v53 = vor.u32 1.1754944e-38, %v1269_v49  ;;  %vm1268_vm2 = vcmp.eq.f32.partialorder %v1267_v42, 8.507059e+37  ;;  %v2371_v3 = vld [vmem:[#allocation5 + $0x28] sm:$0xf]  ;;  %v2572_v4 = vld [vmem:[#allocation5 + $0x34] sm:$0xf0] }
 0x456   : > { %v1285_v57 = vor.u32 1.1754944e-38, %v1284_v7  ;;  %vm1283_vm3 = vcmp.eq.f32.partialorder %v1282_v29, 8.507059e+37  ;;  %v2365_v7 = vld [vmem:[#allocation5 + $0x30] sm:$0xf0] }
 0x457   : > { %v2741_v11 = vpop.eup %2740 }
 0x458   : > { %v1257_v21 = vadd.f32 1.0, %v2741_v11  ;;  %v2372_v11 = vor.u32 %v2572_v4, %v2371_v3  ;;  %v2561_v4 = vld [vmem:[%s3014_s8] sm:$0xff] }
 0x459   : > { %v2743_v22 = vpop.eup %2742 }
 0x45a   : > { %v2745_v27 = vpop.eup %2744  ;;  %v1259_v38 = vmul.f32 %v2743_v22, %v1255_v59  ;;  %2746 = vrcp.f32 %v1257_v21  ;;  %vm1264_vm12 = vweird.f32 %v2743_v22  ;;  %v1299_v25 = vand.u32 2147483648, %v1257_v21 }
 0x45b   : > { %v1274_v39 = vmul.f32 %v2745_v27, %v1256_v60  ;;  %2748 = vtanh.f32 %v1245_v26  ;;  %vm1279_vm13 = vweird.f32 %v2745_v27  ;;  %vm1265_vm0 = vmor %vm1263_vm14, %vm1264_vm12  ;;  %vm1293_vm5 = vweird.f32 %v1257_v21 }
 0x45c   : > { %v1260_v40 = vsub.f32 1.0, %v1259_v38  ;;  %vm1280_vm1 = vmor %vm1278_vm15, %vm1279_vm13  ;;  %v1297_v32 = vand.u32 2147483647, %v1257_v21  ;;  %v1300_v45 = vor.u32 1.1754944e-38, %v1299_v25  ;;  %v2363_v38 = vld [vmem:[#allocation5 + $0x20] sm:$0xf] }
 0x45d   : > { %v1275_v41 = vsub.f32 1.0, %v1274_v39  ;;  %v2571_v39 = vld [vmem:[#allocation5 + $0x2c] sm:$0xf0] }
 0x45e   : > { %v1261_v37 = vmul.f32 %v2743_v22, %v1260_v40  ;;  %vm1298_vm7 = vcmp.eq.f32.partialorder %v1297_v32, 8.507059e+37  ;;  %v2569_v40 = vld [vmem:[#allocation5 + $0x24] sm:$0xf]  ;;  %v2364_v49 = vor.u32 %v2571_v39, %v2363_v38 }
 0x45f   : > { %v1276_v31 = vmul.f32 %v2745_v27, %v1275_v41  ;;  %v2368_v29 = vor.u32 %v2569_v40, %v2365_v7  ;;  %v1436_v7 = vld [vmem:[%s3185_s13 + $0xf0] sm:$0xff] }
 0x460   : > { %v2747_v50 = vpop.eup %2746  ;;  %v1262_v51 = vadd.f32 %v2743_v22, %v1261_v37  ;;  %v2355_v37 = vld [vmem:[#allocation5 + $0x8] sm:$0xf] }
 0x461   : > { %v1289_v52 = vmul.f32 %v2747_v50, %v1257_v21  ;;  %v1277_v54 = vadd.f32 %v2745_v27, %v1276_v31  ;;  %v2749_v61 = vpop.eup %2748  ;;  %vm1294_vm4 = vweird.f32 %v2747_v50  ;;  %v2570_v21 = vld [vmem:[#allocation5 + $0x2c] sm:$0xf] }
 0x462   : > { %v1266_v58 = vsel %vm1265_vm0, %v2743_v22, %v1262_v51  ;;  %vm1295_vm6 = vmor %vm1293_vm5, %vm1294_vm4  ;;  %v2373_v22 = vld [vmem:[#allocation5 + $0x38] sm:$0xf0]  ;;  %v2566_v51 = vld [vmem:[#allocation5 + $0xc] sm:$0xf]  ;;  %vm1646_vm4 = vcmask 261120  }
 0x463   : > { %v1290_v62 = vsub.f32 1.0, %v1289_v52  ;;  %v1271_v63 = vsel %vm1268_vm2, %v1270_v53, %v1266_v58  ;;  %v1281_v0 = vsel %vm1280_vm1, %v2745_v27, %v1277_v54  ;;  %v2376_v27 = vor.u32 %v2570_v21, %v2373_v22  ;;  %v2357_v52 = vld [vmem:[#allocation5 + $0x18] sm:$0xf0]  ;;  %v2567_v58 = vld [vmem:[#allocation5 + $0xc] sm:$0xf0]  ;;  %v1434_v22 = vld [vmem:[%s3185_s13 + $0xe0] sm:$0xff] }
 0x464   : > { %v1286_v1 = vsel %vm1283_vm3, %v1285_v57, %v1281_v0  ;;  %v1305_v2 = vmul.f32 %v2749_v61, %v1271_v63  ;;  %v2347_v57 = vld [vmem:[#allocation5] sm:$0xf]  ;;  %v2565_v61 = vld [vmem:[#allocation5 + $0x4] sm:$0xf]  ;;  %v2349_v63 = vld [vmem:[#allocation5 + $0x10] sm:$0xf0] }
 0x465   : > { %v1304_v16 = vmul.f32 %v1286_v1, %v3351_v6  ;;  %v1291_v17 = vmul.f32 %v2747_v50, %v1290_v62  ;;  %v2352_v25 = vor.u32 %v2565_v61, %v2349_v63  ;;  %v2564_v21 = vld [vmem:[%s3014_s8 + $0x18] sm:$0xff] }
 0x467   : > { %v3391_v20 = vadd.f32 %v1305_v2, %v1304_v16  ;;  %v1292_v24 = vadd.f32 %v2747_v50, %v1291_v17  ;;  %v2360_v2 = vor.u32 %v2566_v51, %v2357_v52  ;;  %v2348_v16 = vor.u32 %v2567_v58, %v2347_v57  ;;  %v1576_v52 = vld [vmem:[%s3561_s3] sm:$0xf] }
 0x468   : > { %v3453_v61 = vperm.slane %v1576_v52, 0 }
 0x469   : > { %2750 = vtanh.f32 %v3391_v20  ;;  %v1296_v33 = vsel %vm1295_vm6, %v2747_v50, %v1292_v24  ;;  %v2568_v50 = vld [vmem:[#allocation5 + $0x14] sm:$0xf0] }
 0x46a   : > { %v1301_v46 = vsel %vm1298_vm7, %v1300_v45, %v1296_v33  ;;  %v2356_v1 = vor.u32 %v2568_v50, %v2355_v37 }
 0x46f   : > { %v2751_v28 = vpop.eup %2750 }
 0x470   : > { %v1308_v6 = vmul.f32 %v2751_v28, %v1301_v46 }
 0x472   : > { %v1309_v15 = vpack.c.bf16 %v1308_v6, %v1308_v6 }
 0x474   : > { %1322 = vmatmul.bf16.vlgmr.msra.gmra.mxu0 %v1309_v15  ;;  %1335 = vmatmul.bf16.vlgmr.msra.gmra.mxu1 %v1309_v15 }
 0x475   : > { %1348 = vmatmul.bf16.vlgmr.msra.gmra.mxu2 %v1309_v15  ;;  %1361 = vmatmul.bf16.vlgmr.msra.gmra.mxu3 %v1309_v15 }
 0x476   : > { %1723 = vmatpush.bf16.msra.mxu2 %v2372_v11  ;;  %1752 = vmatpush.bf16.msra.mxu3 %v2376_v27  ;;  %v2563_v11 = vld [vmem:[%s3014_s8 + $0x10] sm:$0xff] }
 0x477   : > { %1665 = vmatpush.bf16.msra.mxu0 %v2364_v49  ;;  %1694 = vmatpush.bf16.msra.mxu1 %v2368_v29 }
 0x47a   : > { %1724 = vmatpush.bf16.msra.mxu2 %v2356_v1  ;;  %1753 = vmatpush.bf16.msra.mxu3 %v2360_v2  ;;  %v1437_v1 = vld [vmem:[%s3185_s13 + $0xf8] sm:$0xff] }
 0x47b   : > { %1666 = vmatpush.bf16.msra.mxu0 %v2348_v16  ;;  %1695 = vmatpush.bf16.msra.mxu1 %v2352_v25 }
 0x4f1   : > { %v1323_v5 = vpop.f32.mrf.mxu0  ;;  %v1336_v9 = vpop.f32.mrf.mxu1 }
 0x4f2   : > { %v1366_v10 = vadd.f32 %v1323_v5, %v1310_v13  ;;  %v1367_v14 = vadd.f32 %v1336_v9, %v1311_v12 }
 0x4f4   : > { %v2323_v18 = vmul.f32 -1.442695, %v1366_v10  ;;  %v2324_v19 = vmul.f32 -1.442695, %v1367_v14 }
 0x4f6   : > { %2752 = vpow2.f32 %v2323_v18 }
 0x4f7   : > { %2754 = vpow2.f32 %v2324_v19 }
 0x4f8   : > { %v1349_v30 = vpop.f32.mrf.mxu2  ;;  %v1362_v34 = vpop.f32.mrf.mxu3 }
 0x4f9   : > { %v1368_v35 = vadd.f32 %v1349_v30, %v1312_v23  ;;  %v1325_v36 = vpop.f32.mrf.mxu0  ;;  %v1338_v43 = vpop.f32.mrf.mxu1  ;;  %v1369_v31 = vadd.f32 %v1362_v34, %v1313_v8  ;;  %v2562_v8 = vld [vmem:[%s3014_s8 + $0x8] sm:$0xff] }
 0x4fb   : > { %v2325_v44 = vmul.f32 -1.442695, %v1368_v35 }
 0x4fc   : > { %v2753_v47 = vpop.eup %2752 }
 0x4fd   : > { %v2755_v48 = vpop.eup %2754  ;;  %v3397_v55 = vadd.f32 1.0, %v2753_v47  ;;  %2756 = vpow2.f32 %v2325_v44 }
 0x4fe   : > { %v3399_v56 = vadd.f32 1.0, %v2755_v48 }
 0x4ff   : > { %2758 = vrcp.f32 %v3397_v55  ;;  %v1393_v24 = vand.u32 2147483648, %v3397_v55  ;;  %v1391_v45 = vand.u32 2147483647, %v3397_v55  ;;  %vm1387_vm10 = vweird.f32 %v3397_v55 }
 0x500   : > { %2760 = vrcp.f32 %v3399_v56  ;;  %v1351_v59 = vpop.f32.mrf.mxu2  ;;  %v1364_v60 = vpop.f32.mrf.mxu3  ;;  %v1408_v32 = vand.u32 2147483648, %v3399_v56  ;;  %v1406_v46 = vand.u32 2147483647, %v3399_v56  ;;  %vm1402_vm11 = vweird.f32 %v3399_v56 }
 0x501   : > { %v1394_v12 = vor.u32 1.1754944e-38, %v1393_v24  ;;  %vm1392_vm14 = vcmp.eq.f32.partialorder %v1391_v45, 8.507059e+37 }
 0x502   : > { %v1409_v9 = vor.u32 1.1754944e-38, %v1408_v32  ;;  %vm1407_vm15 = vcmp.eq.f32.partialorder %v1406_v46, 8.507059e+37  ;;  %v3471_v46 = vperm.slane %v1576_v52, 3 }
 0x503   : > { %v2757_v26 = vpop.eup %2756 }
 0x504   : > { %v3404_v41 = vadd.f32 1.0, %v2757_v26  ;;  %v1435_v26 = vld [vmem:[%s3185_s13 + $0xe8] sm:$0xff] }
 0x505   : > { %v2759_v42 = vpop.eup %2758 }
 0x506   : > { %v2761_v53 = vpop.eup %2760  ;;  %v1383_v54 = vmul.f32 %v2759_v42, %v3397_v55  ;;  %2762 = vrcp.f32 %v3404_v41  ;;  %vm1388_vm8 = vweird.f32 %v2759_v42  ;;  %v1423_v47 = vand.u32 2147483648, %v3404_v41 }
 0x507   : > { %v1398_v62 = vmul.f32 %v2761_v53, %v3399_v56  ;;  %2764 = vtanh.f32 %v1369_v31  ;;  %vm1403_vm9 = vweird.f32 %v2761_v53  ;;  %vm1389_vm12 = vmor %vm1387_vm10, %vm1388_vm8  ;;  %vm1417_vm1 = vweird.f32 %v3404_v41 }
 0x508   : > { %v1384_v0 = vsub.f32 1.0, %v1383_v54  ;;  %vm1404_vm13 = vmor %vm1402_vm11, %vm1403_vm9  ;;  %v1421_v48 = vand.u32 2147483647, %v3404_v41  ;;  %v1424_v56 = vor.u32 1.1754944e-38, %v1423_v47 }
 0x509   : > { %v1399_v17 = vsub.f32 1.0, %v1398_v62  ;;  %v3456_v62 = vperm.slane %v1576_v52, 1 }
 0x50a   : > { %v1385_v33 = vmul.f32 %v2759_v42, %v1384_v0  ;;  %vm1422_vm3 = vcmp.eq.f32.partialorder %v1421_v48, 8.507059e+37 }
 0x50b   : > { %v1400_v28 = vmul.f32 %v2761_v53, %v1399_v17 }
 0x50c   : > { %v2763_v6 = vpop.eup %2762  ;;  %v1386_v15 = vadd.f32 %v2759_v42, %v1385_v33 }
 0x50d   : > { %v1413_v13 = vmul.f32 %v2763_v6, %v3404_v41  ;;  %v1401_v5 = vadd.f32 %v2761_v53, %v1400_v28  ;;  %v2765_v14 = vpop.eup %2764  ;;  %vm1418_vm0 = vweird.f32 %v2763_v6  ;;  %v3469_v28 = vperm.slane %v1576_v52, 2 }
 0x50e   : > { %v1390_v10 = vsel %vm1389_vm12, %v2759_v42, %v1386_v15  ;;  %vm1419_vm2 = vmor %vm1417_vm1, %vm1418_vm0 }
 0x50f   : > { %v1414_v18 = vsub.f32 1.0, %v1413_v13  ;;  %v1395_v19 = vsel %vm1392_vm14, %v1394_v12, %v1390_v10  ;;  %v1405_v23 = vsel %vm1404_vm13, %v2761_v53, %v1401_v5 }
 0x510   : > { %v1410_v30 = vsel %vm1407_vm15, %v1409_v9, %v1405_v23  ;;  %v1429_v34 = vmul.f32 %v2765_v14, %v1395_v19 }
 0x511   : > { %v1428_v35 = vmul.f32 %v1410_v30, %v3391_v20  ;;  %v1415_v36 = vmul.f32 %v2763_v6, %v1414_v18 }
 0x513   : > { %v3417_v43 = vadd.f32 %v1429_v34, %v1428_v35  ;;  %v1416_v44 = vadd.f32 %v2763_v6, %v1415_v36 }
 0x515   : > { %2766 = vtanh.f32 %v3417_v43  ;;  %v1420_v55 = vsel %vm1419_vm2, %v2763_v6, %v1416_v44 }
 0x516   : > { %v1425_v59 = vsel %vm1422_vm3, %v1424_v56, %v1420_v55 }
 0x51b   : > { %v2767_v20 = vpop.eup %2766 }
 0x51c   : > { %v1432_v60 = vmul.f32 %v2767_v20, %v1425_v59 }
 0x51e   : > { %v1433_v3 = vpack.c.bf16 %v1432_v60, %v1432_v60 }
 0x520   : > { %1446 = vmatmul.bf16.vlgmr.msrb.gmra.mxu0 %v1433_v3  ;;  %1459 = vmatmul.bf16.vlgmr.msrb.gmra.mxu1 %v1433_v3 }
 0x521   : > { %1472 = vmatmul.bf16.vlgmr.msrb.gmra.mxu2 %v1433_v3  ;;  %1485 = vmatmul.bf16.vlgmr.msrb.gmra.mxu3 %v1433_v3 }
 0x530   : > { %2377 = vmatmul.msk.bf16.vlgmr.msra.gmra.mxu0 %vm1646_vm4, %v2561_v4  ;;  %2381 = vmatmul.msk.bf16.vlgmr.msra.gmra.mxu1 %vm1646_vm4, %v2561_v4 }
 0x531   : > { %2385 = vmatmul.msk.bf16.vlgmr.msra.gmra.mxu2 %vm1646_vm4, %v2561_v4  ;;  %2389 = vmatmul.msk.bf16.vlgmr.msra.gmra.mxu3 %vm1646_vm4, %v2561_v4 }
 0x540   : > { %2378 = vmatmul.msk.bf16.gmra.mxu0 %vm1646_vm4, %v2562_v8  ;;  %2382 = vmatmul.msk.bf16.gmra.mxu1 %vm1646_vm4, %v2562_v8 }
 0x541   : > { %2386 = vmatmul.msk.bf16.gmra.mxu2 %vm1646_vm4, %v2562_v8  ;;  %2390 = vmatmul.msk.bf16.gmra.mxu3 %vm1646_vm4, %v2562_v8 }
 0x550   : > { %2379 = vmatmul.msk.bf16.gmra.mxu0 %vm1646_vm4, %v2563_v11  ;;  %2383 = vmatmul.msk.bf16.gmra.mxu1 %vm1646_vm4, %v2563_v11 }
 0x551   : > { %2387 = vmatmul.msk.bf16.gmra.mxu2 %vm1646_vm4, %v2563_v11  ;;  %2391 = vmatmul.msk.bf16.gmra.mxu3 %vm1646_vm4, %v2563_v11 }
 0x560   : > { %2380 = vmatmul.msk.bf16.gmra.mxu0 %vm1646_vm4, %v2564_v21  ;;  %2384 = vmatmul.msk.bf16.gmra.mxu1 %vm1646_vm4, %v2564_v21 }
 0x561   : > { %2388 = vmatmul.msk.bf16.gmra.mxu2 %vm1646_vm4, %v2564_v21  ;;  %2392 = vmatmul.msk.bf16.gmra.mxu3 %vm1646_vm4, %v2564_v21 }
 0x59d   : > { %v1447_v27 = vpop.f32.mrf.mxu0  ;;  %v1460_v38 = vpop.f32.mrf.mxu1 }
 0x59e   : > { %v1490_v39 = vadd.f32 %v1447_v27, %v1434_v22  ;;  %v1491_v40 = vadd.f32 %v1460_v38, %v1435_v26 }
 0x5a0   : > { %v2326_v41 = vmul.f32 -1.442695, %v1490_v39  ;;  %v2327_v49 = vmul.f32 -1.442695, %v1491_v40 }
 0x5a2   : > { %2768 = vpow2.f32 %v2326_v41 }
 0x5a3   : > { %2770 = vpow2.f32 %v2327_v49 }
 0x5a4   : > { %v1473_v37 = vpop.f32.mrf.mxu2  ;;  %v1486_v42 = vpop.f32.mrf.mxu3 }
 0x5a5   : > { %v1492_v31 = vadd.f32 %v1473_v37, %v1436_v7  ;;  %v1449_v29 = vpop.f32.mrf.mxu0  ;;  %v1462_v50 = vpop.f32.mrf.mxu1  ;;  %v1493_v33 = vadd.f32 %v1486_v42, %v1437_v1 }
 0x5a7   : > { %v2328_v51 = vmul.f32 -1.442695, %v1492_v31 }
 0x5a8   : > { %v2769_v53 = vpop.eup %2768 }
 0x5a9   : > { %v2771_v54 = vpop.eup %2770  ;;  %v3449_v57 = vadd.f32 1.0, %v2769_v53  ;;  %2772 = vpow2.f32 %v2328_v51 }
 0x5aa   : > { %v3451_v58 = vadd.f32 1.0, %v2771_v54 }
 0x5ab   : > { %2774 = vrcp.f32 %v3449_v57  ;;  %v1515_v5 = vand.u32 2147483647, %v3449_v57  ;;  %v1517_v9 = vand.u32 2147483648, %v3449_v57  ;;  %vm1511_vm7 = vweird.f32 %v3449_v57 }
 0x5ac   : > { %2776 = vrcp.f32 %v3451_v58  ;;  %v1475_v63 = vpop.f32.mrf.mxu2  ;;  %v1488_v0 = vpop.f32.mrf.mxu3  ;;  %v1532_v19 = vand.u32 2147483648, %v3451_v58  ;;  %v1530_v55 = vand.u32 2147483647, %v3451_v58  ;;  %vm1526_vm8 = vweird.f32 %v3451_v58 }
 0x5ad   : > { %v1668_v2 = vpop.f32.mrf.mxu0  ;;  %v1697_v16 = vpop.f32.mrf.mxu1  ;;  %v1518_v60 = vor.u32 1.1754944e-38, %v1517_v9  ;;  %vm1516_vm11 = vcmp.eq.f32.partialorder %v1515_v5, 8.507059e+37 }
 0x5ae   : > { %v1669_v17 = vadd.f32 %v1668_v2, %v3453_v61  ;;  %v1698_v24 = vadd.f32 %v1697_v16, %v3456_v62  ;;  %v1533_v8 = vor.u32 1.1754944e-38, %v1532_v19  ;;  %vm1531_vm12 = vcmp.eq.f32.partialorder %v1530_v55, 8.507059e+37 }
 0x5af   : > { %v2773_v25 = vpop.eup %2772 }
 0x5b0   : > { %v3463_v32 = vadd.f32 1.0, %v2773_v25  ;;  %1778 = vst [vmem:[%s3465_s17] sm:$0xff] %v1669_v17 }
 0x5b1   : > { %v2775_v45 = vpop.eup %2774  ;;  %1779 = vst [vmem:[%s3465_s17 + $0x8] sm:$0xff] %v1698_v24 }
 0x5b2   : > { %v2777_v6 = vpop.eup %2776  ;;  %v1507_v15 = vmul.f32 %v2775_v45, %v3449_v57  ;;  %2778 = vrcp.f32 %v3463_v32  ;;  %vm1512_vm5 = vweird.f32 %v2775_v45  ;;  %v1547_v53 = vand.u32 2147483648, %v3463_v32 }
 0x5b3   : > { %v1522_v13 = vmul.f32 %v2777_v6, %v3451_v58  ;;  %2780 = vtanh.f32 %v1493_v33  ;;  %vm1527_vm6 = vweird.f32 %v2777_v6  ;;  %vm1513_vm9 = vmor %vm1511_vm7, %vm1512_vm5  ;;  %vm1541_vm14 = vweird.f32 %v3463_v32 }
 0x5b4   : > { %v1508_v12 = vsub.f32 1.0, %v1507_v15  ;;  %v1726_v10 = vpop.f32.mrf.mxu2  ;;  %v1755_v14 = vpop.f32.mrf.mxu3  ;;  %vm1528_vm10 = vmor %vm1526_vm8, %vm1527_vm6  ;;  %v1548_v63 = vor.u32 1.1754944e-38, %v1547_v53 }
 0x5b5   : > { %v1523_v18 = vsub.f32 1.0, %v1522_v13  ;;  %v1727_v23 = vadd.f32 %v1726_v10, %v3469_v28  ;;  %v1756_v30 = vadd.f32 %v1755_v14, %v3471_v46  ;;  %v1670_v34 = vpop.f32.mrf.mxu0  ;;  %v1699_v35 = vpop.f32.mrf.mxu1 }
 0x5b6   : > { %v1509_v36 = vmul.f32 %v2775_v45, %v1508_v12  ;;  %v1671_v44 = vadd.f32 %v1670_v34, %v3453_v61  ;;  %v1700_v47 = vadd.f32 %v1699_v35, %v3456_v62 }
 0x5b7   : > { %v1524_v48 = vmul.f32 %v2777_v6, %v1523_v18  ;;  %1780 = vst [vmem:[%s3465_s17 + $0x10] sm:$0xff] %v1727_v23 }
 0x5b8   : > { %v2779_v56 = vpop.eup %2778  ;;  %v1510_v20 = vadd.f32 %v2775_v45, %v1509_v36  ;;  %1781 = vst [vmem:[%s3465_s17 + $0x18] sm:$0xff] %v1756_v30 }
 0x5b9   : > { %v1537_v59 = vmul.f32 %v2779_v56, %v3463_v32  ;;  %v1525_v3 = vadd.f32 %v2777_v6, %v1524_v48  ;;  %1782 = vst [vmem:[%s3465_s17 + $0x20] sm:$0xff] %v1671_v44  ;;  %v2781_v4 = vpop.eup %2780  ;;  %vm1542_vm13 = vweird.f32 %v2779_v56 }
 0x5ba   : > { %v1514_v11 = vsel %vm1513_vm9, %v2775_v45, %v1510_v20  ;;  %1783 = vst [vmem:[%s3465_s17 + $0x28] sm:$0xff] %v1700_v47  ;;  %vm1543_vm15 = vmor %vm1541_vm14, %vm1542_vm13 }
 0x5bb   : > { %v1538_v21 = vsub.f32 1.0, %v1537_v59  ;;  %v1519_v22 = vsel %vm1516_vm11, %v1518_v60, %v1514_v11  ;;  %v1529_v26 = vsel %vm1528_vm10, %v2777_v6, %v1525_v3 }
 0x5bc   : > { %v1534_v27 = vsel %vm1531_vm12, %v1533_v8, %v1529_v26  ;;  %v1553_v38 = vmul.f32 %v2781_v4, %v1519_v22  ;;  %v1728_v39 = vpop.f32.mrf.mxu2  ;;  %v1757_v40 = vpop.f32.mrf.mxu3 }
 0x5bd   : > { %v1539_v41 = vmul.f32 %v2779_v56, %v1538_v21  ;;  %v1552_v49 = vmul.f32 %v1534_v27, %v3417_v43  ;;  %v1729_v7 = vadd.f32 %v1728_v39, %v3469_v28  ;;  %v1758_v37 = vadd.f32 %v1757_v40, %v3471_v46  ;;  %v1673_v42 = vpop.f32.mrf.mxu0  ;;  %v1702_v31 = vpop.f32.mrf.mxu1 }
 0x5be   : > { %v1674_v29 = vadd.f32 %v1673_v42, %v3453_v61  ;;  %v1703_v51 = vadd.f32 %v1702_v31, %v3456_v62  ;;  %v1545_v43 = vand.u32 2147483647, %v3463_v32 }
 0x5bf   : > { %v1554_v50 = vadd.f32 %v1553_v38, %v1552_v49  ;;  %1784 = vst [vmem:[%s3465_s17 + $0x30] sm:$0xff] %v1729_v7  ;;  %v1540_v52 = vadd.f32 %v2779_v56, %v1539_v41 }
 0x5c0   : > { %1785 = vst [vmem:[%s3465_s17 + $0x38] sm:$0xff] %v1758_v37  ;;  %vm1546_vm0 = vcmp.eq.f32.partialorder %v1545_v43, 8.507059e+37 }
 0x5c1   : > { %2782 = vtanh.f32 %v1554_v50  ;;  %1559 = vst [vmem:[#allocation3] sm:$0xff] %v1554_v50  ;;  %v1544_v54 = vsel %vm1543_vm15, %v2779_v56, %v1540_v52 }
 0x5c2   : > { %1786 = vst [vmem:[%s3465_s17 + $0x40] sm:$0xff] %v1674_v29  ;;  %v1549_v32 = vsel %vm1546_vm0, %v1548_v63, %v1544_v54 }
 0x5c3   : > { %1787 = vst [vmem:[%s3465_s17 + $0x48] sm:$0xff] %v1703_v51 }
 0x5c4   : > { %v1731_v57 = vpop.f32.mrf.mxu2  ;;  %v1760_v58 = vpop.f32.mrf.mxu3 }
 0x5c5   : > { %v1732_v0 = vadd.f32 %v1731_v57, %v3469_v28  ;;  %v1761_v1 = vadd.f32 %v1760_v58, %v3471_v46  ;;  %v1675_v2 = vpop.f32.mrf.mxu0  ;;  %v1704_v16 = vpop.f32.mrf.mxu1 }
 0x5c6   : > { %v1676_v17 = vadd.f32 %v1675_v2, %v3453_v61  ;;  %v1705_v24 = vadd.f32 %v1704_v16, %v3456_v62 }
 0x5c7   : > { %v2783_v25 = vpop.eup %2782  ;;  %1788 = vst [vmem:[%s3465_s17 + $0x50] sm:$0xff] %v1732_v0 }
 0x5c8   : > { %v1556_v33 = vmul.f32 %v2783_v25, %v1549_v32  ;;  %1789 = vst [vmem:[%s3465_s17 + $0x58] sm:$0xff] %v1761_v1 }
 0x5c9   : > { %1790 = vst [vmem:[%s3465_s17 + $0x60] sm:$0xff] %v1676_v17 }
 0x5ca   : > { %v1557_v45 = vpack.c.bf16 %v1556_v33, %v1556_v33  ;;  %1791 = vst [vmem:[%s3465_s17 + $0x68] sm:$0xff] %v1705_v24 }
 0x5cc   : > { %1558 = vst [vmem:[#allocation2] sm:$0xf] %v1557_v45  ;;  %v1733_v6 = vpop.f32.mrf.mxu2  ;;  %v1762_v15 = vpop.f32.mrf.mxu3 }
 0x5cd   : > { %v1734_v13 = vadd.f32 %v1733_v6, %v3469_v28  ;;  %v1763_v12 = vadd.f32 %v1762_v15, %v3471_v46  ;;  %v1678_v5 = vpop.f32.mrf.mxu0  ;;  %v1707_v9 = vpop.f32.mrf.mxu1 }
 0x5ce   : > { %v1679_v10 = vadd.f32 %v1678_v5, %v3453_v61  ;;  %v1708_v14 = vadd.f32 %v1707_v9, %v3456_v62 }
 0x5cf   : > { %1792 = vst [vmem:[%s3465_s17 + $0x70] sm:$0xff] %v1734_v13 }
 0x5d0   : > { %1793 = vst [vmem:[%s3465_s17 + $0x78] sm:$0xff] %v1763_v12 }
 0x5d1   : > { %1794 = vst [vmem:[%s3465_s17 + $0x80] sm:$0xff] %v1679_v10 }
 0x5d2   : > { %1795 = vst [vmem:[%s3465_s17 + $0x88] sm:$0xff] %v1708_v14 }
 0x5d4   : > { %v1736_v18 = vpop.f32.mrf.mxu2  ;;  %v1765_v19 = vpop.f32.mrf.mxu3 }
 0x5d5   : > { %v1737_v23 = vadd.f32 %v1736_v18, %v3469_v28  ;;  %v1766_v30 = vadd.f32 %v1765_v19, %v3471_v46  ;;  %v1680_v34 = vpop.f32.mrf.mxu0  ;;  %v1709_v35 = vpop.f32.mrf.mxu1 }
 0x5d6   : > { %v1681_v36 = vadd.f32 %v1680_v34, %v3453_v61  ;;  %v1710_v44 = vadd.f32 %v1709_v35, %v3456_v62 }
 0x5d7   : > { %1796 = vst [vmem:[%s3465_s17 + $0x90] sm:$0xff] %v1737_v23 }
 0x5d8   : > { %1797 = vst [vmem:[%s3465_s17 + $0x98] sm:$0xff] %v1766_v30 }
 0x5d9   : > { %1798 = vst [vmem:[%s3465_s17 + $0xa0] sm:$0xff] %v1681_v36 }
 0x5da   : > { %1799 = vst [vmem:[%s3465_s17 + $0xa8] sm:$0xff] %v1710_v44 }
 0x5dc   : > { %v1738_v47 = vpop.f32.mrf.mxu2  ;;  %v1767_v48 = vpop.f32.mrf.mxu3 }
 0x5dd   : > { %v1739_v55 = vadd.f32 %v1738_v47, %v3469_v28  ;;  %v1768_v56 = vadd.f32 %v1767_v48, %v3471_v46  ;;  %v1683_v20 = vpop.f32.mrf.mxu0  ;;  %v1712_v59 = vpop.f32.mrf.mxu1 }
 0x5de   : > { %v1684_v60 = vadd.f32 %v1683_v20, %v3453_v61  ;;  %v1713_v3 = vadd.f32 %v1712_v59, %v3456_v62 }
 0x5df   : > { %1800 = vst [vmem:[%s3465_s17 + $0xb0] sm:$0xff] %v1739_v55 }
 0x5e0   : > { %1801 = vst [vmem:[%s3465_s17 + $0xb8] sm:$0xff] %v1768_v56 }
 0x5e1   : > { %1802 = vst [vmem:[%s3465_s17 + $0xc0] sm:$0xff] %v1684_v60 }
 0x5e2   : > { %1803 = vst [vmem:[%s3465_s17 + $0xc8] sm:$0xff] %v1713_v3 }
 0x5e4   : > { %v1741_v4 = vpop.f32.mrf.mxu2  ;;  %v1770_v8 = vpop.f32.mrf.mxu3 }
 0x5e5   : > { %v1742_v11 = vadd.f32 %v1741_v4, %v3469_v28  ;;  %v1771_v21 = vadd.f32 %v1770_v8, %v3471_v46  ;;  %v1685_v22 = vpop.f32.mrf.mxu0  ;;  %v1714_v26 = vpop.f32.mrf.mxu1 }
 0x5e6   : > { %v1686_v27 = vadd.f32 %v1685_v22, %v3453_v61  ;;  %v1715_v38 = vadd.f32 %v1714_v26, %v3456_v62 }
 0x5e7   : > { %1804 = vst [vmem:[%s3465_s17 + $0xd0] sm:$0xff] %v1742_v11 }
 0x5e8   : > { %1805 = vst [vmem:[%s3465_s17 + $0xd8] sm:$0xff] %v1771_v21 }
 0x5e9   : > { %1806 = vst [vmem:[%s3465_s17 + $0xe0] sm:$0xff] %v1686_v27 }
 0x5ea   : > { %1807 = vst [vmem:[%s3465_s17 + $0xe8] sm:$0xff] %v1715_v38 }
 0x5ec   : > { %v1743_v39 = vpop.f32.mrf.mxu2  ;;  %v1772_v40 = vpop.f32.mrf.mxu3  ;;  %1813 = sbr.rel (%p2395_p12) target bundleno = 1697 (0x6a1), region = 64 }
 0x5ed   : > { %v1744_v41 = vadd.f32 %v1743_v39, %v3469_v28  ;;  %v1773_v49 = vadd.f32 %v1772_v40, %v3471_v46 }
 0x5ef   : > { %1808 = vst [vmem:[%s3465_s17 + $0xf0] sm:$0xff] %v1744_v41 }
 0x5f0   : > { %1809 = vst [vmem:[%s3465_s17 + $0xf8] sm:$0xff] %v1773_v49 }
 0x5f1   : > { %v2510_v7 = vld [vmem:[#allocation10 + $0xe0] sm:$0xf]  ;;  %v2604_v37 = vld [vmem:[#allocation10 + $0xec] sm:$0xf0]  ;;  %v2602_v61 = vld [vmem:[#allocation10 + $0xe4] sm:$0xf] }
 0x5f2   : > { %v2511_v42 = vor.u32 %v2604_v37, %v2510_v7  ;;  %v2512_v62 = vld [vmem:[#allocation10 + $0xf0] sm:$0xf0]  ;;  %v2518_v31 = vld [vmem:[#allocation10 + $0xe8] sm:$0xf]  ;;  %v2605_v29 = vld [vmem:[#allocation10 + $0xf4] sm:$0xf0] }
 0x5f3   : > { %v2515_v50 = vor.u32 %v2602_v61, %v2512_v62  ;;  %v2519_v51 = vor.u32 %v2605_v29, %v2518_v31  ;;  %v2603_v52 = vld [vmem:[#allocation10 + $0xec] sm:$0xf]  ;;  %v2520_v53 = vld [vmem:[#allocation10 + $0xf8] sm:$0xf0]  ;;  %v2494_v43 = vld [vmem:[#allocation10 + $0xc0] sm:$0xf] }
 0x5f4   : > { %2017 = vmatpush.bf16.msra.mxu0 %v2511_v42  ;;  %v2523_v28 = vor.u32 %v2603_v52, %v2520_v53  ;;  %v2600_v46 = vld [vmem:[#allocation10 + $0xcc] sm:$0xf0]  ;;  %v2598_v54 = vld [vmem:[#allocation10 + $0xc4] sm:$0xf]  ;;  %v2496_v57 = vld [vmem:[#allocation10 + $0xd0] sm:$0xf0] }
 0x5f5   : > { %2030 = vmatpush.bf16.msra.mxu1 %v2515_v50  ;;  %2043 = vmatpush.bf16.msra.mxu2 %v2519_v51  ;;  %v2495_v58 = vor.u32 %v2600_v46, %v2494_v43  ;;  %v2499_v63 = vor.u32 %v2598_v54, %v2496_v57  ;;  %v2502_v0 = vld [vmem:[#allocation10 + $0xc8] sm:$0xf]  ;;  %v2601_v1 = vld [vmem:[#allocation10 + $0xd4] sm:$0xf0]  ;;  %v2599_v2 = vld [vmem:[#allocation10 + $0xcc] sm:$0xf] }
 0x5f6   : > { %2056 = vmatpush.bf16.msra.mxu3 %v2523_v28  ;;  %v2503_v16 = vor.u32 %v2601_v1, %v2502_v0  ;;  %v2504_v17 = vld [vmem:[#allocation10 + $0xd8] sm:$0xf0]  ;;  %v2478_v24 = vld [vmem:[#allocation10 + $0xa0] sm:$0xf]  ;;  %v2596_v25 = vld [vmem:[#allocation10 + $0xac] sm:$0xf0] }
 0x5f7   : > { %v2507_v32 = vor.u32 %v2599_v2, %v2504_v17  ;;  %v2594_v33 = vld [vmem:[#allocation10 + $0xa4] sm:$0xf]  ;;  %v2480_v45 = vld [vmem:[#allocation10 + $0xb0] sm:$0xf0]  ;;  %v2486_v6 = vld [vmem:[#allocation10 + $0xa8] sm:$0xf]  ;;  %v2479_v15 = vor.u32 %v2596_v25, %v2478_v24 }
 0x5f8   : > { %2018 = vmatpush.bf16.msra.mxu0 %v2495_v58  ;;  %v2597_v13 = vld [vmem:[#allocation10 + $0xb4] sm:$0xf0]  ;;  %v2595_v12 = vld [vmem:[#allocation10 + $0xac] sm:$0xf]  ;;  %v2488_v5 = vld [vmem:[#allocation10 + $0xb8] sm:$0xf0]  ;;  %v2483_v9 = vor.u32 %v2594_v33, %v2480_v45 }
 0x5f9   : > { %2031 = vmatpush.bf16.msra.mxu1 %v2499_v63  ;;  %2044 = vmatpush.bf16.msra.mxu2 %v2503_v16  ;;  %v2487_v10 = vor.u32 %v2597_v13, %v2486_v6  ;;  %v2462_v14 = vld [vmem:[#allocation10 + $0x80] sm:$0xf]  ;;  %v2592_v18 = vld [vmem:[#allocation10 + $0x8c] sm:$0xf0]  ;;  %v2590_v19 = vld [vmem:[#allocation10 + $0x84] sm:$0xf]  ;;  %v2491_v23 = vor.u32 %v2595_v12, %v2488_v5 }
 0x5fa   : > { %2057 = vmatpush.bf16.msra.mxu3 %v2507_v32  ;;  %v2464_v30 = vld [vmem:[#allocation10 + $0x90] sm:$0xf0]  ;;  %v2470_v34 = vld [vmem:[#allocation10 + $0x88] sm:$0xf]  ;;  %v2593_v35 = vld [vmem:[#allocation10 + $0x94] sm:$0xf0]  ;;  %v2463_v47 = vor.u32 %v2592_v18, %v2462_v14 }
 0x5fb   : > { %v2591_v36 = vld [vmem:[#allocation10 + $0x8c] sm:$0xf]  ;;  %v2472_v44 = vld [vmem:[#allocation10 + $0x98] sm:$0xf0]  ;;  %v2467_v48 = vor.u32 %v2590_v19, %v2464_v30  ;;  %v2471_v55 = vor.u32 %v2593_v35, %v2470_v34  ;;  %v2446_v56 = vld [vmem:[#allocation10 + $0x60] sm:$0xf] }
 0x5fc   : > { %2019 = vmatpush.bf16.msra.mxu0 %v2479_v15  ;;  %v2588_v20 = vld [vmem:[#allocation10 + $0x6c] sm:$0xf0]  ;;  %v2586_v59 = vld [vmem:[#allocation10 + $0x64] sm:$0xf]  ;;  %v2475_v60 = vor.u32 %v2591_v36, %v2472_v44  ;;  %v2448_v3 = vld [vmem:[#allocation10 + $0x70] sm:$0xf0] }
 0x5fd   : > { %2032 = vmatpush.bf16.msra.mxu1 %v2483_v9  ;;  %2045 = vmatpush.bf16.msra.mxu2 %v2487_v10  ;;  %v2454_v4 = vld [vmem:[#allocation10 + $0x68] sm:$0xf]  ;;  %v2589_v8 = vld [vmem:[#allocation10 + $0x74] sm:$0xf0]  ;;  %v2587_v11 = vld [vmem:[#allocation10 + $0x6c] sm:$0xf]  ;;  %v2447_v22 = vor.u32 %v2588_v20, %v2446_v56  ;;  %v2451_v26 = vor.u32 %v2586_v59, %v2448_v3 }
 0x5fe   : > { %2058 = vmatpush.bf16.msra.mxu3 %v2491_v23  ;;  %v2456_v21 = vld [vmem:[#allocation10 + $0x78] sm:$0xf0]  ;;  %v2455_v27 = vor.u32 %v2589_v8, %v2454_v4  ;;  %v2430_v38 = vld [vmem:[#allocation10 + $0x40] sm:$0xf]  ;;  %v2584_v39 = vld [vmem:[#allocation10 + $0x4c] sm:$0xf0] }
 0x5ff   : > { %v2582_v40 = vld [vmem:[#allocation10 + $0x44] sm:$0xf]  ;;  %v2459_v41 = vor.u32 %v2587_v11, %v2456_v21  ;;  %v2432_v49 = vld [vmem:[#allocation10 + $0x50] sm:$0xf0]  ;;  %v2438_v7 = vld [vmem:[#allocation10 + $0x48] sm:$0xf]  ;;  %v2431_v62 = vor.u32 %v2584_v39, %v2430_v38 }
 0x600   : > { %2020 = vmatpush.bf16.msra.mxu0 %v2463_v47  ;;  %v2585_v37 = vld [vmem:[#allocation10 + $0x54] sm:$0xf0]  ;;  %v2583_v61 = vld [vmem:[#allocation10 + $0x4c] sm:$0xf]  ;;  %v2440_v42 = vld [vmem:[#allocation10 + $0x58] sm:$0xf0]  ;;  %v2435_v31 = vor.u32 %v2582_v40, %v2432_v49 }
 0x601   : > { %2033 = vmatpush.bf16.msra.mxu1 %v2467_v48  ;;  %2046 = vmatpush.bf16.msra.mxu2 %v2471_v55  ;;  %v2439_v29 = vor.u32 %v2585_v37, %v2438_v7  ;;  %v2414_v50 = vld [vmem:[#allocation10 + $0x20] sm:$0xf]  ;;  %v2580_v51 = vld [vmem:[#allocation10 + $0x2c] sm:$0xf0]  ;;  %v2578_v52 = vld [vmem:[#allocation10 + $0x24] sm:$0xf]  ;;  %v2443_v53 = vor.u32 %v2583_v61, %v2440_v42 }
 0x602   : > { %2059 = vmatpush.bf16.msra.mxu3 %v2475_v60  ;;  %v2416_v43 = vld [vmem:[#allocation10 + $0x30] sm:$0xf0]  ;;  %v2422_v28 = vld [vmem:[#allocation10 + $0x28] sm:$0xf]  ;;  %v2581_v46 = vld [vmem:[#allocation10 + $0x34] sm:$0xf0]  ;;  %v2415_v58 = vor.u32 %v2580_v51, %v2414_v50 }
 0x603   : > { %v2579_v54 = vld [vmem:[#allocation10 + $0x2c] sm:$0xf]  ;;  %v2424_v57 = vld [vmem:[#allocation10 + $0x38] sm:$0xf0]  ;;  %v2419_v63 = vor.u32 %v2578_v52, %v2416_v43  ;;  %v2423_v0 = vor.u32 %v2581_v46, %v2422_v28  ;;  %v2398_v1 = vld [vmem:[#allocation10] sm:$0xf] }
 0x604   : > { %2021 = vmatpush.bf16.msra.mxu0 %v2447_v22  ;;  %v2576_v2 = vld [vmem:[#allocation10 + $0xc] sm:$0xf0]  ;;  %v2574_v16 = vld [vmem:[#allocation10 + $0x4] sm:$0xf]  ;;  %v2427_v17 = vor.u32 %v2579_v54, %v2424_v57  ;;  %v2400_v24 = vld [vmem:[#allocation10 + $0x10] sm:$0xf0] }
 0x605   : > { %2034 = vmatpush.bf16.msra.mxu1 %v2451_v26  ;;  %2047 = vmatpush.bf16.msra.mxu2 %v2455_v27  ;;  %v2406_v25 = vld [vmem:[#allocation10 + $0x8] sm:$0xf]  ;;  %v2577_v32 = vld [vmem:[#allocation10 + $0x14] sm:$0xf0]  ;;  %v2575_v33 = vld [vmem:[#allocation10 + $0xc] sm:$0xf]  ;;  %v2399_v6 = vor.u32 %v2576_v2, %v2398_v1  ;;  %v2403_v15 = vor.u32 %v2574_v16, %v2400_v24 }
 0x606   : > { %2060 = vmatpush.bf16.msra.mxu3 %v2459_v41  ;;  %v2408_v45 = vld [vmem:[#allocation10 + $0x18] sm:$0xf0]  ;;  %v2407_v13 = vor.u32 %v2577_v32, %v2406_v25  ;;  %v1814_v5 = vld [vmem:[#allocation2] sm:$0xf] }
 0x607   : > { %v2411_v12 = vor.u32 %v2575_v33, %v2408_v45  ;;  %v1847_v9 = vld [vmem:[%s3563_s5] sm:$0xf] }
 0x608   : > { %2022 = vmatpush.bf16.msra.mxu0 %v2431_v62  ;;  %v1849_v10 = vperm.slane %v1847_v9, 0  ;;  %v1850_v14 = vperm.slane %v1847_v9, 1  ;;  %v1851_v34 = vperm.slane %v1847_v9, 2  ;;  %v1852_v35 = vperm.slane %v1847_v9, 3 }
 0x609   : > { %2035 = vmatpush.bf16.msra.mxu1 %v2435_v31  ;;  %2048 = vmatpush.bf16.msra.mxu2 %v2439_v29 }
 0x60a   : > { %2061 = vmatpush.bf16.msra.mxu3 %v2443_v53 }
 0x60c   : > { %2023 = vmatpush.bf16.msra.mxu0 %v2415_v58 }
 0x60d   : > { %2036 = vmatpush.bf16.msra.mxu1 %v2419_v63  ;;  %2049 = vmatpush.bf16.msra.mxu2 %v2423_v0 }
 0x60e   : > { %2062 = vmatpush.bf16.msra.mxu3 %v2427_v17 }
 0x610   : > { %2024 = vmatpush.bf16.msra.mxu0 %v2399_v6 }
 0x611   : > { %2037 = vmatpush.bf16.msra.mxu1 %v2403_v15  ;;  %2050 = vmatpush.bf16.msra.mxu2 %v2407_v13 }
 0x612   : > { %2063 = vmatpush.bf16.msra.mxu3 %v2411_v12 }
 0x613   : > { %2025 = vmatmul.bf16.vlgmr.msra.gmra.mxu0 %v1814_v5 }
 0x614   : > { %2038 = vmatmul.bf16.vlgmr.msra.gmra.mxu1 %v1814_v5  ;;  %2051 = vmatmul.bf16.vlgmr.msra.gmra.mxu2 %v1814_v5 }
 0x615   : > { %2064 = vmatmul.bf16.vlgmr.msra.gmra.mxu3 %v1814_v5 }
 0x690   : > { %v2026_v18 = vpop.f32.mrf.mxu0 }
 0x691   : > { %v2027_v19 = vadd.f32 %v2026_v18, %v1849_v10  ;;  %v2039_v23 = vpop.f32.mrf.mxu1 }
 0x692   : > { %v2040_v30 = vadd.f32 %v2039_v23, %v1850_v14 }
 0x693   : > { %2069 = vst [vmem:[#allocation11] sm:$0xff] %v2027_v19 }
 0x694   : > { %2070 = vst [vmem:[#allocation11 + $0x8] sm:$0xff] %v2040_v30 }
 0x697   : > { %v2052_v36 = vpop.f32.mrf.mxu2 }
 0x698   : > { %v2053_v44 = vadd.f32 %v2052_v36, %v1851_v34  ;;  %v2065_v47 = vpop.f32.mrf.mxu3  ;;  %v2028_v48 = vpop.f32.mrf.mxu0 }
 0x699   : > { %v2066_v55 = vadd.f32 %v2065_v47, %v1852_v35  ;;  %v2041_v56 = vpop.f32.mrf.mxu1 }
 0x69a   : > { %2071 = vst [vmem:[#allocation11 + $0x10] sm:$0xff] %v2053_v44 }
 0x69b   : > { %2072 = vst [vmem:[#allocation11 + $0x18] sm:$0xff] %v2066_v55 }
 0x69f   : > { %v2054_v20 = vpop.f32.mrf.mxu2 }
 0x6a0   : > { %v2067_v59 = vpop.f32.mrf.mxu3 }
 0x6a1 PF: > { %p2638_p13 = scmp.eq.s32.totalorder %s2971_s22, 1  ;;  %s2929_s20 = smov [#allocation11]  }
 0x6a2   : > { %s2079_s23 = sshll.u32 %s2929_s20, 4  ;;  %s2081_s26 = sshll.u32 %s3564_s6, 4  ;;  %s2080_s23 = int_to_ptr.vmem [resolvable:$true] %s2079_s23  ;;  %s2082_s26 = int_to_ptr.hbm [resolvable:$true] %s2081_s26 }
 0x6a3   : > { %2619 = dma.vmem_to_hbm [thread:$0]  (%p2638_p13), %s2080_s23, 512, %s2082_s26, [#allocation7]  }
 0x6a4   : > { %2915 = dma.done.wait (%p2638_p13), [#allocation7], 512  }
 0x6a5   : > { %2917 = vsyncadd (%p2638_p13), [#allocation7], 4294966784 }
 0x6a6 PF: > { %s19_s21 = sadd.s32 1, %s2920_s21  }
 0x6a7   : > { %p16_p0 = scmp.ge.s32.totalorder %s19_s21, 4  }
 0x6a9   :  { %18 = sbr.rel (!%p16_p0) target bundleno = 3 (0x3), region = 95 }
 0x6ae   :  { %2095 = vsyncpa [#allocation6], 1 }
 0x6af   :  { %2097 = vsyncpa [#allocation6 + $0x1], 1 }
 0x6b0   :  { %2098 = vsyncpa [#allocation9], 1 }
 0x6b1   :  { %2099 = vsyncpa [#allocation7], 1 }
 0x6b2   :  { %2101 = vsyncpa [#allocation7 + $0x1], 1 }

</bundles_post_ra>
